<compile_context>
chip_gen: v7x
topology: tpu7x:2x2x1
jax: 0.10.0
libtpu: 0.0.40
codegen_flags: <defaults>
</compile_context>

<pallas_src>
import functools

import jax
import jax.numpy as jnp
from jax import lax
from jax.experimental import pallas as pl
from jax.experimental.pallas import tpu as pltpu


def _mem_attn_kernel(x_ref, wqkv_ref, mem_ref, wout_ref, b_ref, o_ref, *,
                     heads, scale):
    # x_ref:    (1, T, D)   current batch's activations
    # wqkv_ref: (D, 3D)     fused QKV projection (right-multiply form), resident
    # mem_ref:  (M, D)      learned memory (shared across batch), resident
    # wout_ref: (D, D)      output projection (right-multiply form), resident
    # b_ref:    (1, D)      output projection bias (f32), resident
    # o_ref:    (1, T, D)   output block for this batch
    T = x_ref.shape[1]
    D = x_ref.shape[2]
    hd = D // heads

    x = x_ref[0]                                                     # (T, D)

    # --- fused QKV projection: one lane-dense matmul, f32 accumulate ---
    qkv = jnp.dot(x, wqkv_ref[...],
                  preferred_element_type=jnp.float32)                # (T, 3D)
    mem = mem_ref[...].astype(jnp.float32)                           # (M, D)

    # Contract the last (head) dim of both operands directly (no transpose).
    nt_dims = (((1,), (1,)), ((), ()))

    head_outs = []
    for h in range(heads):                       # statically unrolled, H small
        lo, hi = h * hd, (h + 1) * hd
        q_h = qkv[:, lo:hi] * scale                                  # (T, hd)
        k_h = qkv[:, D + lo:D + hi]                                  # (T, hd)
        v_h = qkv[:, 2 * D + lo:2 * D + hi]                          # (T, hd)
        mem_h = mem[:, lo:hi]                                        # (M, hd)

        # scores against memory keys and self keys (no K/V concat needed)
        s_mem = lax.dot_general(q_h, mem_h, nt_dims,
                                preferred_element_type=jnp.float32)  # (T, M)
        s_self = lax.dot_general(q_h, k_h, nt_dims,
                                 preferred_element_type=jnp.float32) # (T, T)

        # joint softmax over the (memory ++ self) key set
        m = jnp.maximum(jnp.max(s_mem, axis=-1, keepdims=True),
                        jnp.max(s_self, axis=-1, keepdims=True))     # (T, 1)
        p_mem = jnp.exp(s_mem - m)
        p_self = jnp.exp(s_self - m)
        denom = (jnp.sum(p_mem, axis=-1, keepdims=True) +
                 jnp.sum(p_self, axis=-1, keepdims=True))            # (T, 1)

        raw = (jnp.dot(p_mem, mem_h, preferred_element_type=jnp.float32) +
               jnp.dot(p_self, v_h, preferred_element_type=jnp.float32))
        # normalize after the value matmul: T*hd multiplies on the EUP recip
        out_h = raw * pl.reciprocal(denom, approx=True)              # (T, hd)
        head_outs.append(out_h)

    # assemble all heads into one lane-dense (T, D) tile ...
    attn_out = jnp.concatenate(head_outs, axis=-1)                   # (T, D)
    # ... and do ONE fused output projection + bias
    out = jnp.dot(attn_out.astype(wout_ref.dtype), wout_ref[...],
                  preferred_element_type=jnp.float32) + b_ref[...]   # (T, D)
    o_ref[0] = out.astype(o_ref.dtype)


def memory_augmented_attention(x, w_qkv, memory, w_out, b_out, heads,
                               compute_dtype=jnp.float32):
    """Forward of the PyTorch MemoryAugmentedAttention module.

    x:      (B, T, D)
    w_qkv:  (3D, D)   PyTorch Linear weight (out, in), bias-free
    memory: (M, D)
    w_out:  (D, D)    PyTorch Linear weight (out, in)
    b_out:  (D,)
    """
    B, T, D = x.shape
    hd = D // heads
    scale = float(hd) ** (-0.5)
    threeD = w_qkv.shape[0]

    # ---- glue (plain JAX): right-multiply slabs, optional bf16 cast ----
    x_c = x.astype(compute_dtype)
    wqkv_r = w_qkv.T.astype(compute_dtype)        # (D, 3D): cols = [q | k | v]
    wout_r = w_out.T.astype(compute_dtype)        # (D, D)
    mem_r = memory.astype(compute_dtype)          # (M, D)
    bias_r = b_out.reshape(1, D).astype(jnp.float32)

    kernel = functools.partial(_mem_attn_kernel, heads=heads, scale=scale)

    grid_spec = pltpu.PrefetchScalarGridSpec(
        num_scalar_prefetch=0,
        grid=(B,),
        in_specs=[
            pl.BlockSpec((1, T, D), lambda b: (b, 0, 0)),        # x (per batch)
            pl.BlockSpec((D, threeD), lambda b: (0, 0)),         # Wqkv (resident)
            pl.BlockSpec(memory.shape, lambda b: (0, 0)),        # memory (resident)
            pl.BlockSpec((D, D), lambda b: (0, 0)),              # Wout (resident)
            pl.BlockSpec((1, D), lambda b: (0, 0)),              # bias (resident)
        ],
        out_specs=pl.BlockSpec((1, T, D), lambda b: (b, 0, 0)),
    )

    return pl.pallas_call(
        kernel,
        out_shape=jax.ShapeDtypeStruct((B, T, D), jnp.float32),
        grid_spec=grid_spec,
        compiler_params=pltpu.CompilerParams(
            dimension_semantics=("parallel",)),   # 2-way parallel → both v7x TCs
    )(x_c, wqkv_r, mem_r, wout_r, bias_r)


def reference_forward(x, w_qkv, memory, w_out, b_out, heads):
    """Pure-JAX re-implementation of the PyTorch forward (for checking)."""
    B, T, D = x.shape
    hd = D // heads
    qkv = x @ w_qkv.T
    q, k, v = jnp.split(qkv, 3, axis=-1)

    def split_heads(t):
        return t.reshape(B, T, heads, hd).transpose(0, 2, 1, 3)

    q, k, v = split_heads(q), split_heads(k), split_heads(v)
    mem = jnp.broadcast_to(memory[None], (B,) + memory.shape)
    mem_h = mem.reshape(B, -1, heads, hd).transpose(0, 2, 1, 3)
    k = jnp.concatenate([mem_h, k], axis=2)
    v = jnp.concatenate([mem_h, v], axis=2)
    scores = jnp.einsum('bhtd,bhsd->bhts', q, k) * (float(hd) ** -0.5)
    attn = jax.nn.softmax(scores, axis=-1)
    out = jnp.einsum('bhts,bhsd->bhtd', attn, v)
    out = out.transpose(0, 2, 1, 3).reshape(B, T, D)
    return out @ w_out.T + b_out


if __name__ == "__main__":
    # Shapes implied by the module usage: x = randn(2, 32, 128)
    B, T, D = 2, 32, 128
    heads = 4
    memory_size = 8

    key = jax.random.PRNGKey(0)
    kx, kqkv, kout_w, kout_b, kmem = jax.random.split(key, 5)

    x = jax.random.normal(kx, (B, T, D), dtype=jnp.float32)
    # PyTorch parameter shapes: Linear weight is (out, in).
    w_qkv = jax.random.normal(kqkv, (3 * D, D), dtype=jnp.float32) * 0.05
    w_out = jax.random.normal(kout_w, (D, D), dtype=jnp.float32) * 0.05
    b_out = jax.random.normal(kout_b, (D,), dtype=jnp.float32) * 0.05
    memory = jax.random.normal(kmem, (memory_size, D), dtype=jnp.float32)

    ref = reference_forward(x, w_qkv, memory, w_out, b_out, heads)

    # f32 path (default) — tight check (slack only for approx reciprocal).
    out_f32 = memory_augmented_attention(x, w_qkv, memory, w_out, b_out, heads)
    out_f32 = jax.block_until_ready(out_f32)
    assert out_f32.shape == (B, T, D)
    assert jnp.allclose(out_f32, ref, atol=2e-3, rtol=2e-3), "f32 mismatch"

    # bf16 path (v6e/v7x MXU / DMA win) — looser tolerance for bf16 inputs.
    out_bf16 = memory_augmented_attention(x, w_qkv, memory, w_out, b_out, heads,
                                          compute_dtype=jnp.bfloat16)
    out_bf16 = jax.block_until_ready(out_bf16)
    assert jnp.allclose(out_bf16, ref, atol=5e-2, rtol=5e-2), "bf16 mismatch"

    print("KERNEL_OK")
</pallas_src>

<mosaic_0001>
module attributes {stable_mosaic.version = 11 : i64} {
  func.func @_mem_attn_kernel(%arg0: i32, %arg1: memref<1x32x128xf32, #tpu.memory_space<vmem>>, %arg2: memref<128x384xf32, #tpu.memory_space<vmem>>, %arg3: memref<8x128xf32, #tpu.memory_space<vmem>>, %arg4: memref<128x128xf32, #tpu.memory_space<vmem>>, %arg5: memref<1x128xf32, #tpu.memory_space<vmem>>, %arg6: memref<1x32x128xf32, #tpu.memory_space<vmem>>) attributes {dimension_semantics = [#tpu.dimension_semantics<parallel>], iteration_bounds = array<i64: 2>, scalar_prefetch = 0 : i64, scratch_operands = 0 : i64, tpu.core_type = #tpu.core_type<tc>, window_params = [{transform_indices = @transform_0, window_bounds = array<i64: 1, 32, 128>}, {pipeline_mode = #tpu.pipeline_mode<synchronous>, transform_indices = @transform_1, window_bounds = array<i64: 128, 384>}, {pipeline_mode = #tpu.pipeline_mode<synchronous>, transform_indices = @transform_2, window_bounds = array<i64: 8, 128>}, {pipeline_mode = #tpu.pipeline_mode<synchronous>, transform_indices = @transform_3, window_bounds = array<i64: 128, 128>}, {pipeline_mode = #tpu.pipeline_mode<synchronous>, transform_indices = @transform_4, window_bounds = array<i64: 1, 128>}, {transform_indices = @transform_5, window_bounds = array<i64: 1, 32, 128>}]} {
    %c0 = arith.constant 0 : index
    %c0_0 = arith.constant 0 : index
    %c0_1 = arith.constant 0 : index
    %0 = vector.load %arg1[%c0, %c0_0, %c0_1] : memref<1x32x128xf32, #tpu.memory_space<vmem>>, vector<1x32x128xf32>
    %1 = vector.shape_cast %0 : vector<1x32x128xf32> to vector<32x128xf32>
    %c0_2 = arith.constant 0 : index
    %c0_3 = arith.constant 0 : index
    %2 = vector.load %arg2[%c0_2, %c0_3] : memref<128x384xf32, #tpu.memory_space<vmem>>, vector<128x384xf32>
    %cst = arith.constant dense<0.000000e+00> : vector<32x384xf32>
    %3 = tpu.matmul %1, %2, %cst {dimension_numbers = #tpu.dot_dimension_numbers<[1], [0], [0], [1], [0, 0, 1, 1], [], []>} : vector<32x128xf32>, vector<128x384xf32>, vector<32x384xf32> -> vector<32x384xf32>
    %c0_4 = arith.constant 0 : index
    %c0_5 = arith.constant 0 : index
    %4 = vector.load %arg3[%c0_4, %c0_5] : memref<8x128xf32, #tpu.memory_space<vmem>>, vector<8x128xf32>
    %5 = vector.extract_strided_slice %3 {offsets = [0, 0], sizes = [32, 32], strides = [1, 1]} : vector<32x384xf32> to vector<32x32xf32>
    %cst_6 = arith.constant 0.176776692 : f32
    %6 = vector.broadcast %cst_6 : f32 to vector<32x32xf32>
    %7 = arith.mulf %5, %6 : vector<32x32xf32>
    %8 = vector.extract_strided_slice %3 {offsets = [0, 128], sizes = [32, 32], strides = [1, 1]} : vector<32x384xf32> to vector<32x32xf32>
    %9 = vector.extract_strided_slice %3 {offsets = [0, 256], sizes = [32, 32], strides = [1, 1]} : vector<32x384xf32> to vector<32x32xf32>
    %10 = vector.extract_strided_slice %4 {offsets = [0, 0], sizes = [8, 32], strides = [1, 1]} : vector<8x128xf32> to vector<8x32xf32>
    %cst_7 = arith.constant dense<0.000000e+00> : vector<32x8xf32>
    %11 = tpu.matmul %7, %10, %cst_7 {dimension_numbers = #tpu.dot_dimension_numbers<[1], [1], [0], [0], [0, 0, 1, 0], [], []>} : vector<32x32xf32>, vector<8x32xf32>, vector<32x8xf32> -> vector<32x8xf32>
    %cst_8 = arith.constant dense<0.000000e+00> : vector<32x32xf32>
    %12 = tpu.matmul %7, %8, %cst_8 {dimension_numbers = #tpu.dot_dimension_numbers<[1], [1], [0], [0], [0, 0, 1, 0], [], []>} : vector<32x32xf32>, vector<32x32xf32>, vector<32x32xf32> -> vector<32x32xf32>
    %cst_9 = arith.constant dense<0xFF800000> : vector<32xf32>
    %13 = vector.multi_reduction <maximumf>, %11, %cst_9 [1] : vector<32x8xf32> to vector<32xf32>
    %14 = vector.shape_cast %13 : vector<32xf32> to vector<32x1xf32>
    %cst_10 = arith.constant dense<0xFF800000> : vector<32xf32>
    %15 = vector.multi_reduction <maximumf>, %12, %cst_10 [1] : vector<32x32xf32> to vector<32xf32>
    %16 = vector.shape_cast %15 : vector<32xf32> to vector<32x1xf32>
    %17 = arith.maximumf %14, %16 : vector<32x1xf32>
    %18 = vector.broadcast %17 : vector<32x1xf32> to vector<32x8xf32>
    %19 = arith.subf %11, %18 : vector<32x8xf32>
    %20 = math.exp %19 : vector<32x8xf32>
    %21 = vector.broadcast %17 : vector<32x1xf32> to vector<32x32xf32>
    %22 = arith.subf %12, %21 : vector<32x32xf32>
    %23 = math.exp %22 : vector<32x32xf32>
    %cst_11 = arith.constant dense<0.000000e+00> : vector<32xf32>
    %24 = vector.multi_reduction <add>, %20, %cst_11 [1] : vector<32x8xf32> to vector<32xf32>
    %25 = vector.shape_cast %24 : vector<32xf32> to vector<32x1xf32>
    %cst_12 = arith.constant dense<0.000000e+00> : vector<32xf32>
    %26 = vector.multi_reduction <add>, %23, %cst_12 [1] : vector<32x32xf32> to vector<32xf32>
    %27 = vector.shape_cast %26 : vector<32xf32> to vector<32x1xf32>
    %28 = arith.addf %25, %27 : vector<32x1xf32>
    %cst_13 = arith.constant dense<0.000000e+00> : vector<32x32xf32>
    %29 = tpu.matmul %20, %10, %cst_13 {dimension_numbers = #tpu.dot_dimension_numbers<[1], [0], [0], [1], [0, 0, 1, 1], [], []>} : vector<32x8xf32>, vector<8x32xf32>, vector<32x32xf32> -> vector<32x32xf32>
    %cst_14 = arith.constant dense<0.000000e+00> : vector<32x32xf32>
    %30 = tpu.matmul %23, %9, %cst_14 {dimension_numbers = #tpu.dot_dimension_numbers<[1], [0], [0], [1], [0, 0, 1, 1], [], []>} : vector<32x32xf32>, vector<32x32xf32>, vector<32x32xf32> -> vector<32x32xf32>
    %31 = arith.addf %29, %30 : vector<32x32xf32>
    %32 = tpu.reciprocal %28 {approx = true} : vector<32x1xf32> -> vector<32x1xf32>
    %33 = vector.broadcast %32 : vector<32x1xf32> to vector<32x32xf32>
    %34 = arith.mulf %31, %33 : vector<32x32xf32>
    %35 = vector.extract_strided_slice %3 {offsets = [0, 32], sizes = [32, 32], strides = [1, 1]} : vector<32x384xf32> to vector<32x32xf32>
    %cst_15 = arith.constant 0.176776692 : f32
    %36 = vector.broadcast %cst_15 : f32 to vector<32x32xf32>
    %37 = arith.mulf %35, %36 : vector<32x32xf32>
    %38 = vector.extract_strided_slice %3 {offsets = [0, 160], sizes = [32, 32], strides = [1, 1]} : vector<32x384xf32> to vector<32x32xf32>
    %39 = vector.extract_strided_slice %3 {offsets = [0, 288], sizes = [32, 32], strides = [1, 1]} : vector<32x384xf32> to vector<32x32xf32>
    %40 = vector.extract_strided_slice %4 {offsets = [0, 32], sizes = [8, 32], strides = [1, 1]} : vector<8x128xf32> to vector<8x32xf32>
    %cst_16 = arith.constant dense<0.000000e+00> : vector<32x8xf32>
    %41 = tpu.matmul %37, %40, %cst_16 {dimension_numbers = #tpu.dot_dimension_numbers<[1], [1], [0], [0], [0, 0, 1, 0], [], []>} : vector<32x32xf32>, vector<8x32xf32>, vector<32x8xf32> -> vector<32x8xf32>
    %cst_17 = arith.constant dense<0.000000e+00> : vector<32x32xf32>
    %42 = tpu.matmul %37, %38, %cst_17 {dimension_numbers = #tpu.dot_dimension_numbers<[1], [1], [0], [0], [0, 0, 1, 0], [], []>} : vector<32x32xf32>, vector<32x32xf32>, vector<32x32xf32> -> vector<32x32xf32>
    %cst_18 = arith.constant dense<0xFF800000> : vector<32xf32>
    %43 = vector.multi_reduction <maximumf>, %41, %cst_18 [1] : vector<32x8xf32> to vector<32xf32>
    %44 = vector.shape_cast %43 : vector<32xf32> to vector<32x1xf32>
    %cst_19 = arith.constant dense<0xFF800000> : vector<32xf32>
    %45 = vector.multi_reduction <maximumf>, %42, %cst_19 [1] : vector<32x32xf32> to vector<32xf32>
    %46 = vector.shape_cast %45 : vector<32xf32> to vector<32x1xf32>
    %47 = arith.maximumf %44, %46 : vector<32x1xf32>
    %48 = vector.broadcast %47 : vector<32x1xf32> to vector<32x8xf32>
    %49 = arith.subf %41, %48 : vector<32x8xf32>
    %50 = math.exp %49 : vector<32x8xf32>
    %51 = vector.broadcast %47 : vector<32x1xf32> to vector<32x32xf32>
    %52 = arith.subf %42, %51 : vector<32x32xf32>
    %53 = math.exp %52 : vector<32x32xf32>
    %cst_20 = arith.constant dense<0.000000e+00> : vector<32xf32>
    %54 = vector.multi_reduction <add>, %50, %cst_20 [1] : vector<32x8xf32> to vector<32xf32>
    %55 = vector.shape_cast %54 : vector<32xf32> to vector<32x1xf32>
    %cst_21 = arith.constant dense<0.000000e+00> : vector<32xf32>
    %56 = vector.multi_reduction <add>, %53, %cst_21 [1] : vector<32x32xf32> to vector<32xf32>
    %57 = vector.shape_cast %56 : vector<32xf32> to vector<32x1xf32>
    %58 = arith.addf %55, %57 : vector<32x1xf32>
    %cst_22 = arith.constant dense<0.000000e+00> : vector<32x32xf32>
    %59 = tpu.matmul %50, %40, %cst_22 {dimension_numbers = #tpu.dot_dimension_numbers<[1], [0], [0], [1], [0, 0, 1, 1], [], []>} : vector<32x8xf32>, vector<8x32xf32>, vector<32x32xf32> -> vector<32x32xf32>
    %cst_23 = arith.constant dense<0.000000e+00> : vector<32x32xf32>
    %60 = tpu.matmul %53, %39, %cst_23 {dimension_numbers = #tpu.dot_dimension_numbers<[1], [0], [0], [1], [0, 0, 1, 1], [], []>} : vector<32x32xf32>, vector<32x32xf32>, vector<32x32xf32> -> vector<32x32xf32>
    %61 = arith.addf %59, %60 : vector<32x32xf32>
    %62 = tpu.reciprocal %58 {approx = true} : vector<32x1xf32> -> vector<32x1xf32>
    %63 = vector.broadcast %62 : vector<32x1xf32> to vector<32x32xf32>
    %64 = arith.mulf %61, %63 : vector<32x32xf32>
    %65 = vector.extract_strided_slice %3 {offsets = [0, 64], sizes = [32, 32], strides = [1, 1]} : vector<32x384xf32> to vector<32x32xf32>
    %cst_24 = arith.constant 0.176776692 : f32
    %66 = vector.broadcast %cst_24 : f32 to vector<32x32xf32>
    %67 = arith.mulf %65, %66 : vector<32x32xf32>
    %68 = vector.extract_strided_slice %3 {offsets = [0, 192], sizes = [32, 32], strides = [1, 1]} : vector<32x384xf32> to vector<32x32xf32>
    %69 = vector.extract_strided_slice %3 {offsets = [0, 320], sizes = [32, 32], strides = [1, 1]} : vector<32x384xf32> to vector<32x32xf32>
    %70 = vector.extract_strided_slice %4 {offsets = [0, 64], sizes = [8, 32], strides = [1, 1]} : vector<8x128xf32> to vector<8x32xf32>
    %cst_25 = arith.constant dense<0.000000e+00> : vector<32x8xf32>
    %71 = tpu.matmul %67, %70, %cst_25 {dimension_numbers = #tpu.dot_dimension_numbers<[1], [1], [0], [0], [0, 0, 1, 0], [], []>} : vector<32x32xf32>, vector<8x32xf32>, vector<32x8xf32> -> vector<32x8xf32>
    %cst_26 = arith.constant dense<0.000000e+00> : vector<32x32xf32>
    %72 = tpu.matmul %67, %68, %cst_26 {dimension_numbers = #tpu.dot_dimension_numbers<[1], [1], [0], [0], [0, 0, 1, 0], [], []>} : vector<32x32xf32>, vector<32x32xf32>, vector<32x32xf32> -> vector<32x32xf32>
    %cst_27 = arith.constant dense<0xFF800000> : vector<32xf32>
    %73 = vector.multi_reduction <maximumf>, %71, %cst_27 [1] : vector<32x8xf32> to vector<32xf32>
    %74 = vector.shape_cast %73 : vector<32xf32> to vector<32x1xf32>
    %cst_28 = arith.constant dense<0xFF800000> : vector<32xf32>
    %75 = vector.multi_reduction <maximumf>, %72, %cst_28 [1] : vector<32x32xf32> to vector<32xf32>
    %76 = vector.shape_cast %75 : vector<32xf32> to vector<32x1xf32>
    %77 = arith.maximumf %74, %76 : vector<32x1xf32>
    %78 = vector.broadcast %77 : vector<32x1xf32> to vector<32x8xf32>
    %79 = arith.subf %71, %78 : vector<32x8xf32>
    %80 = math.exp %79 : vector<32x8xf32>
    %81 = vector.broadcast %77 : vector<32x1xf32> to vector<32x32xf32>
    %82 = arith.subf %72, %81 : vector<32x32xf32>
    %83 = math.exp %82 : vector<32x32xf32>
    %cst_29 = arith.constant dense<0.000000e+00> : vector<32xf32>
    %84 = vector.multi_reduction <add>, %80, %cst_29 [1] : vector<32x8xf32> to vector<32xf32>
    %85 = vector.shape_cast %84 : vector<32xf32> to vector<32x1xf32>
    %cst_30 = arith.constant dense<0.000000e+00> : vector<32xf32>
    %86 = vector.multi_reduction <add>, %83, %cst_30 [1] : vector<32x32xf32> to vector<32xf32>
    %87 = vector.shape_cast %86 : vector<32xf32> to vector<32x1xf32>
    %88 = arith.addf %85, %87 : vector<32x1xf32>
    %cst_31 = arith.constant dense<0.000000e+00> : vector<32x32xf32>
    %89 = tpu.matmul %80, %70, %cst_31 {dimension_numbers = #tpu.dot_dimension_numbers<[1], [0], [0], [1], [0, 0, 1, 1], [], []>} : vector<32x8xf32>, vector<8x32xf32>, vector<32x32xf32> -> vector<32x32xf32>
    %cst_32 = arith.constant dense<0.000000e+00> : vector<32x32xf32>
    %90 = tpu.matmul %83, %69, %cst_32 {dimension_numbers = #tpu.dot_dimension_numbers<[1], [0], [0], [1], [0, 0, 1, 1], [], []>} : vector<32x32xf32>, vector<32x32xf32>, vector<32x32xf32> -> vector<32x32xf32>
    %91 = arith.addf %89, %90 : vector<32x32xf32>
    %92 = tpu.reciprocal %88 {approx = true} : vector<32x1xf32> -> vector<32x1xf32>
    %93 = vector.broadcast %92 : vector<32x1xf32> to vector<32x32xf32>
    %94 = arith.mulf %91, %93 : vector<32x32xf32>
    %95 = vector.extract_strided_slice %3 {offsets = [0, 96], sizes = [32, 32], strides = [1, 1]} : vector<32x384xf32> to vector<32x32xf32>
    %cst_33 = arith.constant 0.176776692 : f32
    %96 = vector.broadcast %cst_33 : f32 to vector<32x32xf32>
    %97 = arith.mulf %95, %96 : vector<32x32xf32>
    %98 = vector.extract_strided_slice %3 {offsets = [0, 224], sizes = [32, 32], strides = [1, 1]} : vector<32x384xf32> to vector<32x32xf32>
    %99 = vector.extract_strided_slice %3 {offsets = [0, 352], sizes = [32, 32], strides = [1, 1]} : vector<32x384xf32> to vector<32x32xf32>
    %100 = vector.extract_strided_slice %4 {offsets = [0, 96], sizes = [8, 32], strides = [1, 1]} : vector<8x128xf32> to vector<8x32xf32>
    %cst_34 = arith.constant dense<0.000000e+00> : vector<32x8xf32>
    %101 = tpu.matmul %97, %100, %cst_34 {dimension_numbers = #tpu.dot_dimension_numbers<[1], [1], [0], [0], [0, 0, 1, 0], [], []>} : vector<32x32xf32>, vector<8x32xf32>, vector<32x8xf32> -> vector<32x8xf32>
    %cst_35 = arith.constant dense<0.000000e+00> : vector<32x32xf32>
    %102 = tpu.matmul %97, %98, %cst_35 {dimension_numbers = #tpu.dot_dimension_numbers<[1], [1], [0], [0], [0, 0, 1, 0], [], []>} : vector<32x32xf32>, vector<32x32xf32>, vector<32x32xf32> -> vector<32x32xf32>
    %cst_36 = arith.constant dense<0xFF800000> : vector<32xf32>
    %103 = vector.multi_reduction <maximumf>, %101, %cst_36 [1] : vector<32x8xf32> to vector<32xf32>
    %104 = vector.shape_cast %103 : vector<32xf32> to vector<32x1xf32>
    %cst_37 = arith.constant dense<0xFF800000> : vector<32xf32>
    %105 = vector.multi_reduction <maximumf>, %102, %cst_37 [1] : vector<32x32xf32> to vector<32xf32>
    %106 = vector.shape_cast %105 : vector<32xf32> to vector<32x1xf32>
    %107 = arith.maximumf %104, %106 : vector<32x1xf32>
    %108 = vector.broadcast %107 : vector<32x1xf32> to vector<32x8xf32>
    %109 = arith.subf %101, %108 : vector<32x8xf32>
    %110 = math.exp %109 : vector<32x8xf32>
    %111 = vector.broadcast %107 : vector<32x1xf32> to vector<32x32xf32>
    %112 = arith.subf %102, %111 : vector<32x32xf32>
    %113 = math.exp %112 : vector<32x32xf32>
    %cst_38 = arith.constant dense<0.000000e+00> : vector<32xf32>
    %114 = vector.multi_reduction <add>, %110, %cst_38 [1] : vector<32x8xf32> to vector<32xf32>
    %115 = vector.shape_cast %114 : vector<32xf32> to vector<32x1xf32>
    %cst_39 = arith.constant dense<0.000000e+00> : vector<32xf32>
    %116 = vector.multi_reduction <add>, %113, %cst_39 [1] : vector<32x32xf32> to vector<32xf32>
    %117 = vector.shape_cast %116 : vector<32xf32> to vector<32x1xf32>
    %118 = arith.addf %115, %117 : vector<32x1xf32>
    %cst_40 = arith.constant dense<0.000000e+00> : vector<32x32xf32>
    %119 = tpu.matmul %110, %100, %cst_40 {dimension_numbers = #tpu.dot_dimension_numbers<[1], [0], [0], [1], [0, 0, 1, 1], [], []>} : vector<32x8xf32>, vector<8x32xf32>, vector<32x32xf32> -> vector<32x32xf32>
    %cst_41 = arith.constant dense<0.000000e+00> : vector<32x32xf32>
    %120 = tpu.matmul %113, %99, %cst_41 {dimension_numbers = #tpu.dot_dimension_numbers<[1], [0], [0], [1], [0, 0, 1, 1], [], []>} : vector<32x32xf32>, vector<32x32xf32>, vector<32x32xf32> -> vector<32x32xf32>
    %121 = arith.addf %119, %120 : vector<32x32xf32>
    %122 = tpu.reciprocal %118 {approx = true} : vector<32x1xf32> -> vector<32x1xf32>
    %123 = vector.broadcast %122 : vector<32x1xf32> to vector<32x32xf32>
    %124 = arith.mulf %121, %123 : vector<32x32xf32>
    %125 = tpu.concatenate %34, %64, %94, %124 in 1 : vector<32x32xf32>, vector<32x32xf32>, vector<32x32xf32>, vector<32x32xf32> -> vector<32x128xf32>
    %c0_42 = arith.constant 0 : index
    %c0_43 = arith.constant 0 : index
    %126 = vector.load %arg4[%c0_42, %c0_43] : memref<128x128xf32, #tpu.memory_space<vmem>>, vector<128x128xf32>
    %cst_44 = arith.constant dense<0.000000e+00> : vector<32x128xf32>
    %127 = tpu.matmul %125, %126, %cst_44 {dimension_numbers = #tpu.dot_dimension_numbers<[1], [0], [0], [1], [0, 0, 1, 1], [], []>} : vector<32x128xf32>, vector<128x128xf32>, vector<32x128xf32> -> vector<32x128xf32>
    %c0_45 = arith.constant 0 : index
    %c0_46 = arith.constant 0 : index
    %128 = vector.load %arg5[%c0_45, %c0_46] : memref<1x128xf32, #tpu.memory_space<vmem>>, vector<1x128xf32>
    %129 = vector.broadcast %128 : vector<1x128xf32> to vector<32x128xf32>
    %130 = arith.addf %127, %129 : vector<32x128xf32>
    %c0_47 = arith.constant 0 : index
    %c0_48 = arith.constant 0 : index
    %c0_49 = arith.constant 0 : index
    %131 = vector.load %arg6[%c0_47, %c0_48, %c0_49] : memref<1x32x128xf32, #tpu.memory_space<vmem>>, vector<1x32x128xf32>
    %132 = vector.shape_cast %131 : vector<1x32x128xf32> to vector<32x128xf32>
    %133 = vector.shape_cast %130 : vector<32x128xf32> to vector<1x32x128xf32>
    tpu.vector_store %arg6[%c0_47, %c0_48, %c0_49], %133 {strides = array<i32>} : memref<1x32x128xf32, #tpu.memory_space<vmem>>, vector<1x32x128xf32>,
    return
  }
  func.func @transform_0(%arg0: i32) -> (i32, i32, i32) {
    %c0_i32 = arith.constant 0 : i32
    %c0_i32_0 = arith.constant 0 : i32
    %c0_i32_1 = arith.constant 0 : i32
    return %arg0, %c0_i32, %c0_i32_0 : i32, i32, i32
  }
  func.func @transform_1(%arg0: i32) -> (i32, i32) {
    %c0_i32 = arith.constant 0 : i32
    %c0_i32_0 = arith.constant 0 : i32
    %c0_i32_1 = arith.constant 0 : i32
    return %c0_i32, %c0_i32_0 : i32, i32
  }
  func.func @transform_2(%arg0: i32) -> (i32, i32) {
    %c0_i32 = arith.constant 0 : i32
    %c0_i32_0 = arith.constant 0 : i32
    %c0_i32_1 = arith.constant 0 : i32
    return %c0_i32, %c0_i32_0 : i32, i32
  }
  func.func @transform_3(%arg0: i32) -> (i32, i32) {
    %c0_i32 = arith.constant 0 : i32
    %c0_i32_0 = arith.constant 0 : i32
    %c0_i32_1 = arith.constant 0 : i32
    return %c0_i32, %c0_i32_0 : i32, i32
  }
  func.func @transform_4(%arg0: i32) -> (i32, i32) {
    %c0_i32 = arith.constant 0 : i32
    %c0_i32_0 = arith.constant 0 : i32
    %c0_i32_1 = arith.constant 0 : i32
    return %c0_i32, %c0_i32_0 : i32, i32
  }
  func.func @transform_5(%arg0: i32) -> (i32, i32, i32) {
    %c0_i32 = arith.constant 0 : i32
    %c0_i32_0 = arith.constant 0 : i32
    %c0_i32_1 = arith.constant 0 : i32
    return %arg0, %c0_i32, %c0_i32_0 : i32, i32, i32
  }
}

</mosaic_0001>

<bundles_post_ra>
// kernel: tpu_custom_call.1
= control target key start
LH: loop header
LB: loop body
LE: loop exit
PB: predicated region body
PF: predicated region fallthrough
CT: control target
= control target key end

     0   :  { %10 = vsyncpa [#allocation3], 0  ;;  %s4770_s0 = inlined_call_operand.hbm [shape: f32[2,32,128], index: 0, kind: input, shape index: {}]   ;;  %s4771_s1 = inlined_call_operand.hbm [shape: f32[128,384], index: 1, kind: input, shape index: {}]   ;;  %s4772_s2 = inlined_call_operand.hbm [shape: f32[8,128], index: 2, kind: input, shape index: {}]   ;;  %s4773_s3 = inlined_call_operand.hbm [shape: f32[128,128], index: 3, kind: input, shape index: {}]   ;;  %s4774_s4 = inlined_call_operand.vmem [shape: f32[1,128], index: 4, kind: input, shape index: {}]   ;;  %s4775_s5 = inlined_call_operand.hbm [shape: f32[2,32,128], index: 5, kind: output, shape index: {}]  }
   0x1   :  { %12 = vsyncpa [#allocation3 + $0x1], 0 }
   0x2   :  { %13 = vsyncpa [#allocation6], 0 }
   0x3   :  { %14 = vsyncpa [#allocation9], 0 }
   0x4   :  { %15 = vsyncpa [#allocation4], 0 }
   0x5   :  { %17 = vsyncpa [#allocation4 + $0x1], 0  ;;  %s3997_s18 = smov 0   ;;  %s3999_s19 = smov 0  }
   0x6   :  { %s4001_s20 = smov 0   ;;  %s4003_s21 = smov 0  }
   0x7 LB: > { %s4018_s22 = sadd.s32 4294967295, %s3950_s21   ;;  %s2794_s23 = sadd.s32 4294967294, %s3950_s21   ;;  %s3950_s21 = sphi %s4003_s21, %s4800_s21   ;;  %s3946_s20 = sphi %s4001_s20, %s4799_s20   ;;  %s3942_s19 = sphi %s3999_s19, %s4798_s19   ;;  %s3938_s18 = sphi %s3997_s18, %s4797_s18  }
   0x8   : > { %p43_p0 = scmp.ne.s32.totalorder %s3942_s19, %s3938_s18  ;;  %p4776_p1 = scmp.eq.s32.totalorder %s4018_s22, 0 }
   0x9   : > { %p157_p3 = scmp.eq.s32.totalorder %s2794_s23, 1  ;;  %p2795_p5 = scmp.ge.s32.totalorder %s3950_s21, 1 }
   0xa   : > { %p4027_p4 = por %p4776_p1, %p43_p0  ;;  %p164_p7 = scmp.lt.s32.totalorder %s3950_s21, 3 }
   0xb   : > { %p4032_p6 = por %p157_p3, %p43_p0  ;;  %s3952_s27 = smov [#allocation5]  }
   0xc   : > { %s4779_s24 = scalar_select %p4027_p4, 1, 0 }
   0xd   : > { %s4780_s25 = scalar_select %p4032_p6, 1, 0 }
   0xe   : > { %p4037_p8 = pnand %p2795_p5, %p164_p7  ;;  %s176_s28 = sshll.u32 %s3952_s27, 4  ;;  %s4041_s28 = int_to_ptr.vmem [resolvable:$true] %s176_s28 }
   0xf   : > { %s3953_s30 = smov [#allocation7]   ;;  %s3954_s7 = smov [#allocation8]  }
  0x10   : > { %s4781_s26 = scalar_select %p4037_p8, 1, 0 }
  0x11   : > { %p3505_p9 = pneg %p4037_p8  ;;  %s190_s6 = sshll.u32 %s3953_s30, 4  ;;  %s4052_s6 = int_to_ptr.vmem [resolvable:$true] %s190_s6 }
  0x12   : > { %s4054_s8 = sshll.u32 %s3954_s7, 4  ;;  %s3762_s11 = scalar_lea.hbm %s4771_s1, 6144  ;;  %s201_s8 = int_to_ptr.vmem [resolvable:$true] %s4054_s8 }
  0x13   : > { %p4048_p11 = pnand %p3505_p9, %p4776_p1  ;;  %p3763_p12 = scmp.ne.s32.totalorder %s4771_s1, %s3762_s11 }
  0x14   : > { %p3769_p5 = scmp.lt.u32.totalorder %s3762_s11, %s4771_s1 }
  0x15   : > { %p4064_p13 = pneg %p4048_p11 }
  0x17   : > { %p3765_p0 = pnand %p4064_p13, %p3763_p12 }
  0x19   : > { %p3766_p3 = pneg %p3765_p0 }
  0x1b   : > { %p3771_p7 = pnand %p3769_p5, %p3766_p3 }
  0x1d   : > { %3774 = shalt.err (!%p3771_p7)
}
  0x1e   : > { %s3775_s17 = scalar_lea.vmem %s4041_s28, 6144  ;;  %p3783_p2 = scmp.lt.s32.totalorder %s4041_s28, %s4041_s28 }
  0x1f   : > { %p3776_p9 = scmp.ne.s32.totalorder %s4041_s28, %s3775_s17  ;;  %p3784_p6 = scmp.lt.s32.totalorder %s3775_s17, %s3775_s17 }
  0x21   : > { %p3778_p10 = pnand %p3776_p9, %p4064_p13  ;;  %p3785_p12 = por %p3784_p6, %p3783_p2 }
  0x23   : > { %p3779_p1 = pneg %p3778_p10 }
  0x25   : > { %p3786_p0 = pnand %p3785_p12, %p3779_p1 }
  0x27   : > { %3789 = shalt.err (!%p3786_p0)
}
  0x28   : > { %s3955_s23 = smov 384   ;;  %s3956_s27 = smov 24  }
  0x29   : > { %3508 = dma.hbm_to_vmem [thread:$0]  (!%p4048_p11), %s4771_s1, 6144, %s4041_s28, [#allocation6], %s3955_s23, %s3955_s23, %s3956_s27  }
  0x2a   : > { %s3790_s11 = scalar_lea.hbm %s4772_s2, 128 }
  0x2b   : > { %p3791_p2 = scmp.ne.s32.totalorder %s4772_s2, %s3790_s11  ;;  %p3797_p10 = scmp.lt.u32.totalorder %s3790_s11, %s4772_s2 }
  0x2d   : > { %p3793_p1 = pnand %p3791_p2, %p4064_p13 }
  0x2f   : > { %p3794_p6 = pneg %p3793_p1 }
  0x31   : > { %p3799_p3 = pnand %p3797_p10, %p3794_p6 }
  0x33   : > { %3802 = shalt.err (!%p3799_p3)
}
  0x34   : > { %s3803_s28 = scalar_lea.vmem %s4052_s6, 128  ;;  %p3811_p12 = scmp.lt.s32.totalorder %s4052_s6, %s4052_s6 }
  0x35   : > { %p3804_p5 = scmp.ne.s32.totalorder %s4052_s6, %s3803_s28  ;;  %p3812_p0 = scmp.lt.s32.totalorder %s3803_s28, %s3803_s28 }
  0x37   : > { %p3806_p7 = pnand %p3804_p5, %p4064_p13  ;;  %p3813_p2 = por %p3812_p0, %p3811_p12 }
  0x39   : > { %p3807_p9 = pneg %p3806_p7 }
  0x3b   : > { %p3814_p1 = pnand %p3813_p2, %p3807_p9 }
  0x3d   : > { %3817 = shalt.err (!%p3814_p1)
}
  0x3e   : > { %3511 = dma.hbm_to_vmem [thread:$0]  (!%p4048_p11), %s4772_s2, 128, %s4052_s6, [#allocation6]  }
  0x3f   : > { %s3818_s7 = scalar_lea.hbm %s4773_s3, 2048 }
  0x40   : > { %p3819_p6 = scmp.ne.s32.totalorder %s4773_s3, %s3818_s7  ;;  %p3825_p5 = scmp.lt.u32.totalorder %s3818_s7, %s4773_s3 }
  0x42   : > { %p3821_p10 = pnand %p3819_p6, %p4064_p13 }
  0x44   : > { %p3822_p3 = pneg %p3821_p10 }
  0x46   : > { %p3827_p7 = pnand %p3825_p5, %p3822_p3 }
  0x48   : > { %3830 = shalt.err (!%p3827_p7)
}
  0x49   : > { %s3831_s13 = scalar_lea.vmem %s201_s8, 2048  ;;  %p3839_p2 = scmp.lt.s32.totalorder %s201_s8, %s201_s8 }
  0x4a   : > { %p3832_p9 = scmp.ne.s32.totalorder %s201_s8, %s3831_s13  ;;  %p3840_p1 = scmp.lt.s32.totalorder %s3831_s13, %s3831_s13 }
  0x4c   : > { %p3834_p12 = pnand %p3832_p9, %p4064_p13  ;;  %p3841_p4 = por %p3840_p1, %p3839_p2 }
  0x4e   : > { %p3835_p0 = pneg %p3834_p12 }
  0x50   : > { %p3842_p8 = pnand %p3841_p4, %p3835_p0 }
  0x52   : > { %3845 = shalt.err (!%p3842_p8)
}
  0x53   : > { %s3957_s6 = smov 128   ;;  %s3958_s14 = smov 8  }
  0x54   : > { %3514 = dma.hbm_to_vmem [thread:$0]  (!%p4048_p11), %s4773_s3, 2048, %s201_s8, [#allocation9], %s3957_s6, %s3957_s6, %s3958_s14  }
  0x55   : > { %s4131_s28 = sadd.s32 1, %s3950_s21   ;;  %s30_s23 = sadd.s32 1, %s3946_s20 }
  0x56   : > { %s27_s17 = ssub.s32 %s3950_s21, %s4131_s28  ;;  %p37_p8 = scmp.ne.s32.totalorder %s3946_s20, %s3942_s19 }
  0x57   : > { %p28_p4 = scmp.eq.s32.totalorder %s27_s17, 0  ;;  %p38_p13 = scmp.eq.s32.totalorder %s3950_s21, 0 }
  0x58   : > { %p3526_p6 = scmp.lt.s32.totalorder %s3950_s21, 2  ;;  %p4784_p3 = scmp.eq.s32.totalorder %s4018_s22, 1 }
  0x59   : > { %s4141_s27 = scalar_select %p28_p4, %s3946_s20, %s30_s23  }
  0x5a   : > { %p39_p10 = por %p38_p13, %p37_p8  ;;  %p4145_p5 = por %p4784_p3, %p37_p8 }
  0x5b   : > { %s217_s30 = sand.u32 1, %s3946_s20   ;;  %s2899_s7 = sshll.u32 %s3950_s21, 9 }
  0x5c   : > { %s2800_s8 = sshll.u32 %s217_s30, 5  ;;  %s4154_s11 = scalar_lea.hbm %s4770_s0, %s2899_s7 }
  0x5d   : > { %s221_s12 = scalar_lea.vmem [#allocation2], %s2800_s8  ;;  %p4156_p11 = pnand %p3526_p6, %p39_p10 }
  0x5e   : > { %s228_s13 = sshll.u32 %s221_s12, 4  ;;  %s4162_s16 = scalar_lea.sflag [#allocation3], %s217_s30  ;;  %s4160_s13 = int_to_ptr.vmem [resolvable:$true] %s228_s13 }
  0x5f   : > { %s3846_s17 = scalar_lea.hbm %s4154_s11, 512  ;;  %p3848_p9 = pneg %p4156_p11 }
  0x60   : > { %p3847_p7 = scmp.ne.s32.totalorder %s4154_s11, %s3846_s17  ;;  %s3851_s8 = scalar_lea.hbm %s4770_s0, 1024 }
  0x61   : > { %p3852_p2 = scmp.lt.u32.totalorder %s4154_s11, %s4770_s0  ;;  %p3853_p1 = scmp.lt.u32.totalorder %s3851_s8, %s3846_s17 }
  0x62   : > { %p3849_p12 = pnand %p3848_p9, %p3847_p7  ;;  %p3855_p8 = scmp.lt.u32.totalorder %s3846_s17, %s4154_s11 }
  0x63   : > { %p3854_p4 = por %p3853_p1, %p3852_p2 }
  0x64   : > { %p3850_p0 = pneg %p3849_p12 }
  0x65   : > { %p3856_p13 = por %p3855_p8, %p3854_p4 }
  0x67   : > { %p3857_p6 = pnand %p3856_p13, %p3850_p0 }
  0x69   : > { %3860 = shalt.err (!%p3857_p6)
}
  0x6a   : > { %s3861_s30 = scalar_lea.vmem %s4160_s13, 512  ;;  %s3959_s12 = smov [#allocation2]  }
  0x6b   : > { %p3862_p10 = scmp.ne.s32.totalorder %s4160_s13, %s3861_s30  ;;  %s3866_s23 = sshll.u32 %s3959_s12, 4  ;;  %s3867_s23 = int_to_ptr.vmem [resolvable:$false] %s3866_s23 }
  0x6c   : > { %s3868_s7 = scalar_lea.vmem %s3867_s23, 1024  ;;  %p3869_p12 = scmp.lt.s32.totalorder %s4160_s13, %s3867_s23 }
  0x6d   : > { %p3864_p3 = pnand %p3862_p10, %p3848_p9  ;;  %p3870_p2 = scmp.lt.s32.totalorder %s3868_s7, %s3861_s30 }
  0x6f   : > { %p3865_p7 = pneg %p3864_p3  ;;  %p3871_p1 = por %p3870_p2, %p3869_p12 }
  0x71   : > { %p3872_p4 = pnand %p3871_p1, %p3865_p7 }
  0x73   : > { %3875 = shalt.err (!%p3872_p4)
}
  0x74   : > { %3518 = dma.hbm_to_vmem [thread:$0]  (!%p4156_p11), %s4154_s11, 512, %s4160_s13, %s4162_s16, %s3957_s6, %s3957_s6, %s3958_s14  }
  0x75   : > { %p4787_p9 = scmp.ne.s32.totalorder %s4781_s26, 0 }
  0x76   : > { %s4196_s17 = sand.u32 (!%p4787_p9), 1, %s3942_s19   ;;  %p4788_p0 = scmp.ne.s32.totalorder (!%p4787_p9), %s4779_s24, 0 }
  0x77   : > { %240 = sbr.rel (%p4787_p9) target bundleno = 2573 (0xa0d), region = 40  ;;  %s2804_s8 = sshll.u32 (!%p4787_p9), %s4196_s17, 5 }
  0x78   : > { %s243_s9 = scalar_lea.sflag (!%p4787_p9), [#allocation3], %s4196_s17  ;;  %s4202_s15 = scalar_lea.vmem (!%p4787_p9), [#allocation2], %s2804_s8 }
  0x7e   : > { %3921 = dma.done.wait (%p4788_p0), %s243_s9, 512  }
  0x7f   : > { %3923 = vsyncadd (%p4788_p0), %s243_s9, 4294966784  ;;  %p4789_p11 = scmp.eq.s32.totalorder %s4018_s22, 0 }
  0x81   : > { %3925 = dma.done.wait (%p4789_p11), [#allocation6], 6272   ;;  %p4790_p8 = pmov %p4789_p11 }
  0x83   : > { %3927 = vsyncadd (%p4790_p8), [#allocation6], 4294961024  ;;  %p4791_p13 = pmov %p4790_p8 }
  0x84   : > { %p4792_p6 = pmov %p4790_p8 }
  0x85   : > { %3929 = dma.done.wait (%p4791_p13), [#allocation9], 2048  }
  0x86   : > { %3931 = vsyncadd (%p4792_p6), [#allocation9], 4294965248  ;;  %v3960_v0 = vmov 0.0   ;;  %v290_v1 = vld [vmem:[#allocation5 + $0x8] sm:$0xff]  ;;  %v293_v2 = vld [vmem:[#allocation5 + $0x20] sm:$0xff]  ;;  %vm516_vm0 = vcmask 261120  }
  0x87   : > { %401 = vmatprep.mubr.f32.mxu0 %v3960_v0  ;;  %v289_v3 = vld [vmem:[#allocation5] sm:$0xff]  ;;  %v3297_v4 = vpack.c.bf16 %v293_v2, %v290_v1  ;;  %v292_v5 = vld [vmem:[#allocation5 + $0x18] sm:$0xff]  ;;  %v299_v7 = vld [vmem:[#allocation5 + $0x50] sm:$0xff]  ;;  %vm714_vm2 = vcmask 64512   ;;  %s3961_s24 = smov 96   ;;  %s3962_s26 = smov 64  }
  0x88   : > { %v296_v6 = vld [vmem:[#allocation5 + $0x38] sm:$0xff]  ;;  %v3299_v8 = vpack.c.bf16 %v292_v5, %v289_v3  ;;  %v295_v10 = vld [vmem:[#allocation5 + $0x30] sm:$0xff]  ;;  %v298_v11 = vld [vmem:[#allocation5 + $0x48] sm:$0xff]  ;;  %s3963_s6 = smov 32   ;;  %vm2556_vm3 = vcmask 523264   ;;  %vm2561_vm4 = vcmask 785408  }
  0x89   : > { %v3301_v9 = vpack.c.bf16 %v299_v7, %v296_v6  ;;  %v302_v12 = vld [vmem:[#allocation5 + $0x68] sm:$0xff]  ;;  %3298 = vmatprep.subr.bf16.mxu0 %v3297_v4  ;;  %v305_v13 = vld [vmem:[#allocation5 + $0x80] sm:$0xff]  ;;  %v3303_v14 = vpack.c.bf16 %v298_v11, %v295_v10  ;;  %v304_v17 = vld [vmem:[#allocation5 + $0x78] sm:$0xff]  ;;  %s284_s13 = scalar_lea.vmem [#allocation10], %s2804_s8  ;;  %s2900_s10 = sshll.u32 %s4018_s22, 9 }
  0x8a   : > { %3300 = vmatpush1.bf16.msra.mxu0 %v3299_v8  ;;  %v3305_v15 = vpack.c.bf16 %v305_v13, %v302_v12  ;;  %v301_v16 = vld [vmem:[#allocation5 + $0x60] sm:$0xff]  ;;  %v308_v18 = vld [vmem:[#allocation5 + $0x98] sm:$0xff]  ;;  %v311_v19 = vld [vmem:[#allocation5 + $0xb0] sm:$0xff]  ;;  %s2692_s16 = sshll.u32 %s284_s13, 4  ;;  %s4726_s23 = scalar_lea.hbm %s4775_s5, %s2900_s10  ;;  %s4721_s16 = int_to_ptr.vmem [resolvable:$true] %s2692_s16 }
  0x8b   : > { %3302 = vmatprep.subr.bf16.mxu0 %v3301_v9  ;;  %v3307_v20 = vpack.c.bf16 %v304_v17, %v301_v16  ;;  %v3309_v21 = vpack.c.bf16 %v311_v19, %v308_v18  ;;  %v307_v22 = vld [vmem:[#allocation5 + $0x90] sm:$0xff]  ;;  %v310_v23 = vld [vmem:[#allocation5 + $0xa8] sm:$0xff]  ;;  %v317_v25 = vld [vmem:[#allocation5 + $0xe0] sm:$0xff]  ;;  %s2679_s7 = scalar_lea.sflag [#allocation4], %s4196_s17  ;;  %s3876_s8 = scalar_lea.vmem %s4721_s16, 512 }
  0x8c   : > { %v314_v24 = vld [vmem:[#allocation5 + $0xc8] sm:$0xff]  ;;  %v4218_v26 = vld [vmem:[%s4202_s15] sm:$0xff]  ;;  %v3311_v28 = vpack.c.bf16 %v310_v23, %v307_v22  ;;  %v291_v29 = vld [vmem:[#allocation5 + $0x10] sm:$0xff]  ;;  %p3877_p10 = scmp.ne.s32.totalorder %s4721_s16, %s3876_s8  ;;  %s3964_s22 = smov [#allocation10]  }
  0x8d   : > { %v313_v27 = vld [vmem:[#allocation5 + $0xc0] sm:$0xff]  ;;  %3077 = vmatprep.mubr.f32.mxu1 %v4218_v26  ;;  %v294_v30 = vld [vmem:[#allocation5 + $0x28] sm:$0xff]  ;;  %v3313_v32 = vpack.c.bf16 %v317_v25, %v314_v24  ;;  %v316_v33 = vld [vmem:[#allocation5 + $0xd8] sm:$0xff]  ;;  %s3880_s9 = sshll.u32 %s3964_s22, 4  ;;  %s3881_s9 = int_to_ptr.vmem [resolvable:$false] %s3880_s9 }
  0x8e   : > { %3304 = vmatpush1.bf16.msra.mxu0 %v3303_v14  ;;  %v297_v31 = vld [vmem:[#allocation5 + $0x40] sm:$0xff]  ;;  %v320_v34 = vld [vmem:[#allocation5 + $0xf8] sm:$0xff]  ;;  %v3329_v35 = vpack.c.bf16 %v294_v30, %v291_v29  ;;  %v323_v37 = vld [vmem:[#allocation5 + $0x110] sm:$0xff]  ;;  %v3315_v41 = vpack.c.bf16 %v316_v33, %v313_v27  ;;  %p3878_p3 = pnand %p3877_p10, %p4145_p5  ;;  %p3883_p12 = scmp.lt.s32.totalorder %s4721_s16, %s3881_s9 }
  0x8f   : > { %3306 = vmatprep.subr.bf16.mxu0 %v3305_v15  ;;  %v300_v36 = vld [vmem:[#allocation5 + $0x58] sm:$0xff]  ;;  %v303_v39 = vld [vmem:[#allocation5 + $0x70] sm:$0xff]  ;;  %v306_v40 = vld [vmem:[#allocation5 + $0x88] sm:$0xff]  ;;  %v3317_v42 = vpack.c.bf16 %v323_v37, %v320_v34 }
  0x90   : > { %v3333_v38 = vpack.c.bf16 %v300_v36, %v297_v31  ;;  %3330 = vmatprep.subr.bf16.mxu1 %v3329_v35  ;;  %v319_v43 = vld [vmem:[#allocation5 + $0xf0] sm:$0xff]  ;;  %v322_v44 = vld [vmem:[#allocation5 + $0x108] sm:$0xff]  ;;  %v3337_v46 = vpack.c.bf16 %v306_v40, %v303_v39  ;;  %v329_v47 = vld [vmem:[#allocation5 + $0x140] sm:$0xff]  ;;  %p3879_p7 = pneg %p3878_p3 }
  0x91   : > { %3332 = vmatpush3.bf16.msra.mxu1 %v3329_v35  ;;  %v326_v45 = vld [vmem:[#allocation5 + $0x128] sm:$0xff]  ;;  %v309_v48 = vld [vmem:[#allocation5 + $0xa0] sm:$0xff]  ;;  %v312_v49 = vld [vmem:[#allocation5 + $0xb8] sm:$0xff]  ;;  %v3319_v50 = vpack.c.bf16 %v322_v44, %v319_v43 }
  0x92   : > { %3308 = vmatpush1.bf16.msra.mxu0 %v3307_v20  ;;  %3334 = vmatprep.subr.bf16.mxu1 %v3333_v38  ;;  %v3321_v51 = vpack.c.bf16 %v329_v47, %v326_v45  ;;  %v325_v52 = vld [vmem:[#allocation5 + $0x120] sm:$0xff]  ;;  %v328_v53 = vld [vmem:[#allocation5 + $0x138] sm:$0xff]  ;;  %v3341_v55 = vpack.c.bf16 %v312_v49, %v309_v48  ;;  %v335_v56 = vld [vmem:[#allocation5 + $0x170] sm:$0xff] }
  0x93   : > { %3310 = vmatprep.subr.bf16.mxu0 %v3309_v21  ;;  %v332_v54 = vld [vmem:[#allocation5 + $0x158] sm:$0xff]  ;;  %v315_v57 = vld [vmem:[#allocation5 + $0xd0] sm:$0xff]  ;;  %v318_v58 = vld [vmem:[#allocation5 + $0xe8] sm:$0xff]  ;;  %v3323_v59 = vpack.c.bf16 %v328_v53, %v325_v52 }
  0x94   : > { %v3325_v60 = vpack.c.bf16 %v335_v56, %v332_v54  ;;  %v331_v61 = vld [vmem:[#allocation5 + $0x150] sm:$0xff]  ;;  %v334_v62 = vld [vmem:[#allocation5 + $0x168] sm:$0xff]  ;;  %v3345_v63 = vpack.c.bf16 %v318_v58, %v315_v57  ;;  %v321_v1 = vld [vmem:[#allocation5 + $0x100] sm:$0xff] }
  0x95   : > { %3336 = vmatpush3.bf16.msra.mxu1 %v3333_v38  ;;  %v324_v2 = vld [vmem:[#allocation5 + $0x118] sm:$0xff]  ;;  %v3327_v3 = vpack.c.bf16 %v334_v62, %v331_v61  ;;  %v327_v5 = vld [vmem:[#allocation5 + $0x130] sm:$0xff]  ;;  %v330_v6 = vld [vmem:[#allocation5 + $0x148] sm:$0xff] }
  0x96   : > { %3312 = vmatpush1.bf16.msra.mxu0 %v3311_v28  ;;  %3338 = vmatprep.subr.bf16.mxu1 %v3337_v46  ;;  %v3349_v4 = vpack.c.bf16 %v324_v2, %v321_v1  ;;  %v3353_v7 = vpack.c.bf16 %v330_v6, %v327_v5  ;;  %v333_v8 = vld [vmem:[#allocation5 + $0x160] sm:$0xff]  ;;  %v336_v9 = vld [vmem:[#allocation5 + $0x178] sm:$0xff]  ;;  %v286_v10 = vld [vmem:[%s4202_s15 + $0x8] sm:$0xff] }
  0x97   : > { %3314 = vmatprep.subr.bf16.mxu0 %v3313_v32  ;;  %v3357_v11 = vpack.c.bf16 %v336_v9, %v333_v8  ;;  %v287_v12 = vld [vmem:[%s4202_s15 + $0x10] sm:$0xff]  ;;  %v288_v13 = vld [vmem:[%s4202_s15 + $0x18] sm:$0xff]  ;;  %v4228_v14 = vld [vmem:[#allocation7] sm:$0xff]  ;;  %s3882_s15 = scalar_lea.vmem %s3881_s9, 1024 }
  0x98   : > { %vm4244_vm1 = vmpackc.low %vm516_vm0, %vm516_vm0  ;;  %p3884_p2 = scmp.lt.s32.totalorder %s3882_s15, %s3876_s8 }
  0x99   : > { %3340 = vmatpush3.bf16.msra.mxu1 %v3337_v46 }
  0x9a   : > { %3316 = vmatpush1.bf16.msra.mxu0 %v3315_v41  ;;  %3342 = vmatprep.subr.bf16.mxu1 %v3341_v55  ;;  %p3885_p1 = por %p3884_p2, %p3883_p12 }
  0x9b   : > { %3318 = vmatprep.subr.bf16.mxu0 %v3317_v42 }
  0x9c   : > { %p3886_p4 = pnand %p3885_p1, %p3879_p7 }
  0x9d   : > { %3344 = vmatpush3.bf16.msra.mxu1 %v3341_v55 }
  0x9e   : > { %3320 = vmatpush1.bf16.msra.mxu0 %v3319_v50  ;;  %3346 = vmatprep.subr.bf16.mxu1 %v3345_v63 }
  0x9f   : > { %3322 = vmatprep.subr.bf16.mxu0 %v3321_v51 }
  0xa1   : > { %3348 = vmatpush3.bf16.msra.mxu1 %v3345_v63 }
  0xa2   : > { %3324 = vmatpush1.bf16.msra.mxu0 %v3323_v59  ;;  %3350 = vmatprep.subr.bf16.mxu1 %v3349_v4 }
  0xa3   : > { %3326 = vmatprep.subr.bf16.mxu0 %v3325_v60 }
  0xa5   : > { %3352 = vmatpush3.bf16.msra.mxu1 %v3349_v4 }
  0xa6   : > { %3328 = vmatpush1.bf16.msra.mxu0 %v3327_v3  ;;  %3354 = vmatprep.subr.bf16.mxu1 %v3353_v7 }
  0xa9   : > { %402 = vmatmul.mubr.f32.vlgmr.msra.gmra.mrb[0].mxu0 %v4218_v26  ;;  %3356 = vmatpush3.bf16.msra.mxu1 %v3353_v7 }
  0xaa   : > { %407 = vmatprep.mubr.f32.mxu0 %v3960_v0  ;;  %3358 = vmatprep.subr.bf16.mxu1 %v3357_v11 }
  0xad   : > { %408 = vmatmul.mubr.f32.gmra.mrb[2].mxu0 %v286_v10  ;;  %3360 = vmatpush3.bf16.msra.mxu1 %v3357_v11 }
  0xae   : > { %413 = vmatprep.mubr.f32.mxu0 %v3960_v0  ;;  %3083 = vmatprep.subr.msk.mxu1 %vm516_vm0, %v4228_v14 }
  0xb0   : > { %3078 = vmatmul.mubr.f32.vlgmr.msra.gmra.mrb[0].mxu1 %v286_v10 }
  0xb1   : > { %414 = vmatmul.mubr.f32.gmra.mrb[4].mxu0 %v287_v12  ;;  %3080 = vmatprep.mubr.f32.mxu1 %v287_v12 }
  0xb2   : > { %419 = vmatprep.mubr.f32.mxu0 %v3960_v0 }
  0xb4   : > { %3081 = vmatmul.mubr.f32.gmra.mrb[2].mxu1 %v288_v13 }
  0xb5   : > { %420 = vmatmul.mubr.f32.gmra.mrb[6].mxu0 %v288_v13 }
  0xb6   : > { %3084 = vmatpush3.xpose.msk.msra.mxu1 %vm516_vm0, %v4228_v14 }
 0x17c   : > { %v403_v15 = vpop.f32.mrb[0].mxu0 }
 0x17d   : > { %v4234_v16 = vmul.f32 0.17677669, %v403_v15  ;;  %v405_v17 = vpop.f32.mrb[1].mxu0 }
 0x17f   : > { %3085 = vmatprep.mubr.msk.f32.mxu1 %vm516_vm0, %v4234_v16  ;;  %3099 = vmatprep.mubr.msk.f32.mxu0 %vm516_vm0, %v4234_v16 }
 0x180   : > { %v409_v0 = vpop.f32.mrb[2].mxu0 }
 0x181   : > { %v4240_v18 = vmul.f32 0.17677669, %v409_v0  ;;  %v411_v19 = vpop.f32.mrb[3].mxu0 }
 0x182   : > { %v3361_v21 = vpack.c.bf16 %v411_v19, %v405_v17  ;;  %v4248_v22 = vpack.i.bf16 %v411_v19, %v405_v17 }
 0x183   : > { %3086 = vmatmul.mubr.msk.f32.vlgmr.msra.gmra.mrb[4].mxu1 %vm516_vm0, %v4240_v18  ;;  %v3079_v27 = vpop.f32.mrb[0].mxu1 }
 0x184   : > { %v415_v23 = vpop.f32.mrb[4].mxu0  ;;  %3363 = vmatprep.subr.msk.bf16.mxu0 %vm4244_vm1, %v3361_v21  ;;  %v492_v30 = vpop.f32.mrb[1].mxu1 }
 0x185   : > { %v4254_v24 = vmul.f32 0.17677669, %v415_v23  ;;  %v417_v25 = vpop.f32.mrb[5].mxu0  ;;  %3366 = vmatpush3.bf16.xpose.msk.msra.mxu0 %vm4244_vm1, %v3361_v21  ;;  %v3373_v35 = vpack.c.bf16 %v3079_v27, %v492_v30  ;;  %v4276_v36 = vpack.i.bf16 %v3079_v27, %v492_v30 }
 0x187   : > { %3088 = vmatprep.mubr.msk.f32.mxu1 %vm516_vm0, %v4254_v24  ;;  %v3082_v33 = vpop.f32.mrb[2].mxu1  ;;  %3374 = vmatprep.subr.bf16.mxu1 %v3373_v35 }
 0x188   : > { %v421_v26 = vpop.f32.mrb[6].mxu0  ;;  %v502_v34 = vpop.f32.mrb[3].mxu1  ;;  %3376 = vmatpush3.bf16.msra.mxu1 %v3373_v35 }
 0x189   : > { %v4260_v28 = vmul.f32 0.17677669, %v421_v26  ;;  %v423_v29 = vpop.f32.mrb[7].mxu0  ;;  %v3377_v37 = vpack.c.bf16 %v3082_v33, %v502_v34  ;;  %v4279_v38 = vpack.i.bf16 %v3082_v33, %v502_v34 }
 0x18a   : > { %v3367_v31 = vpack.c.bf16 %v423_v29, %v417_v25  ;;  %v4262_v32 = vpack.i.bf16 %v423_v29, %v417_v25 }
 0x18b   : > { %3089 = vmatmul.mubr.msk.f32.gmra.mrb[6].mxu1 %vm516_vm0, %v4260_v28  ;;  %3378 = vmatprep.subr.bf16.mxu1 %v3377_v37 }
 0x18c   : > { %3369 = vmatprep.subr.msk.bf16.mxu0 %vm4244_vm1, %v3367_v31  ;;  %3380 = vmatpush3.bf16.msra.mxu1 %v3377_v37 }
 0x18d   : > { %3372 = vmatpush3.bf16.xpose.msk.msra.mxu0 %vm4244_vm1, %v3367_v31  ;;  %3119 = vmatprep.subr.mxu1 %v4228_v14 }
 0x194   : > { %3100 = vmatmul.mubr.msk.f32.vlgmr.msra.gmra.mrb[8].mxu0 %vm516_vm0, %v4240_v18 }
 0x195   : > { %3102 = vmatprep.mubr.msk.f32.mxu0 %vm516_vm0, %v4254_v24 }
 0x198   : > { %3103 = vmatmul.mubr.msk.f32.gmra.mrb[10].mxu0 %vm516_vm0, %v4260_v28 }
 0x256   : > { %v3087_v39 = vpop.f32.mrb[4].mxu1 }
 0x257   : > { %v598_v40 = vpop.f32.mrb[5].mxu1  ;;  %v718_v41 = vsel %vm714_vm2, %v3087_v39, -inf }
 0x258   : > { %719 = vmax.xlane.f32.xlu1 %v718_v41  ;;  %v715_v42 = vsel %vm714_vm2, %v598_v40, -inf }
 0x259   : > { %716 = vmax.xlane.f32.xlu0 %v715_v42 }
 0x25e   : > { %v4283_v43 = vpop.f32.mrb[6].mxu1 }
 0x25f   : > { %v608_v44 = vpop.f32.mrb[7].mxu1  ;;  %v724_v53 = vsel %vm714_vm2, %v4283_v43, -inf }
 0x260   : > { %v721_v51 = vsel %vm714_vm2, %v608_v44, -inf }
 0x267   : > { %v3101_v45 = vpop.f32.mrb[8].mxu0 }
 0x268   : > { %v695_v46 = vpop.f32.mrb[9].mxu0  ;;  %v730_v47 = vsel %vm516_vm0, %v3101_v45, -inf }
 0x269   : > { %731 = vmax.xlane.f32.xlu1 %v730_v47  ;;  %v727_v48 = vsel %vm516_vm0, %v695_v46, -inf }
 0x26a   : > { %728 = vmax.xlane.f32.xlu0 %v727_v48 }
 0x26b   : > { %v3104_v49 = vpop.f32.mrb[10].mxu0 }
 0x26c   : > { %v705_v50 = vpop.f32.mrb[11].mxu0  ;;  %v736_v54 = vsel %vm516_vm0, %v3104_v49, -inf }
 0x26d   : > { %v733_v52 = vsel %vm516_vm0, %v705_v50, -inf }
 0x26e   : > { %722 = vmax.xlane.f32.xlu0 %v721_v51  ;;  %734 = vmax.xlane.f32.xlu1 %v733_v52 }
 0x272   : > { %725 = vmax.xlane.f32.xlu0 %v724_v53  ;;  %737 = vmax.xlane.f32.xlu1 %v736_v54 }
 0x283   : > { %3582 = vrot.lane.b32.xlu1 %v4262_v32, %s3961_s24 }
 0x287   : > { %1005 = vrot.lane.b32.xlu1 %v4228_v14, %s3961_s24 }
 0x288   : > { %3577 = vrot.lane.b32.xlu0 %v4248_v22, %s3961_s24 }
 0x28b   : > { %997 = vrot.lane.b32.xlu1 %v4234_v16, %s3961_s24 }
 0x28c   : > { %999 = vrot.lane.b32.xlu0 %v4240_v18, %s3961_s24 }
 0x28f   : > { %1001 = vrot.lane.b32.xlu1 %v4254_v24, %s3961_s24 }
 0x290   : > { %1003 = vrot.lane.b32.xlu0 %v4260_v28, %s3961_s24 }
 0x293   : > { %3587 = vrot.lane.b32.xlu1 %v4276_v36, %s3961_s24 }
 0x2e5   : > { %v720_v55 = vpop.xlane.xlu1 %719 }
 0x2e6   : > { %v717_v56 = vpop.xlane.xlu0 %716 }
 0x2f6   : > { %v732_v57 = vpop.xlane.xlu1 %731 }
 0x2f7   : > { %v740_v58 = vmax.f32 %v720_v55, %v732_v57  ;;  %v729_v59 = vpop.xlane.xlu0 %728 }
 0x2f8   : > { %v739_v60 = vmax.f32 %v717_v56, %v729_v59 }
 0x2f9   : > { %v756_v61 = vsub.f32 %v3101_v45, %v740_v58  ;;  %v744_v12 = vsub.f32 %v3087_v39, %v740_v58 }
 0x2fa   : > { %v755_v62 = vsub.f32 %v695_v46, %v739_v60  ;;  %v743_v8 = vsub.f32 %v598_v40, %v739_v60 }
 0x2fb   : > { %v723_v63 = vpop.xlane.xlu0 %722  ;;  %v735_v1 = vpop.xlane.xlu1 %734  ;;  %v761_v4 = vmul.f32 1.442695, %v756_v61  ;;  %v749_v21 = vmul.f32 1.442695, %v744_v12 }
 0x2fc   : > { %v759_v2 = vmul.f32 1.442695, %v755_v62  ;;  %v741_v3 = vmax.f32 %v723_v63, %v735_v1  ;;  %v747_v15 = vmul.f32 1.442695, %v743_v8 }
 0x2fe   : > { %v757_v5 = vsub.f32 %v705_v50, %v741_v3  ;;  %3666 = vpow2.f32 %v759_v2  ;;  %v745_v17 = vsub.f32 %v608_v44, %v741_v3 }
 0x2ff   : > { %v726_v6 = vpop.xlane.xlu0 %725  ;;  %v738_v7 = vpop.xlane.xlu1 %737  ;;  %3668 = vpow2.f32 %v761_v4 }
 0x300   : > { %v763_v9 = vmul.f32 1.442695, %v757_v5  ;;  %v742_v10 = vmax.f32 %v726_v6, %v738_v7  ;;  %v751_v26 = vmul.f32 1.442695, %v745_v17 }
 0x302   : > { %v758_v11 = vsub.f32 %v3104_v49, %v742_v10  ;;  %3670 = vpow2.f32 %v763_v9  ;;  %v746_v23 = vsub.f32 %v4283_v43, %v742_v10 }
 0x303   : > { %v3583_v13 = vpop.permute.xlu1 %3582  ;;  %v3578_v19 = vpop.permute.xlu0 %3577 }
 0x304   : > { %v765_v0 = vmul.f32 1.442695, %v758_v11  ;;  %v3580_v27 = vunpack.i.h.bf16 %v3578_v19  ;;  %v3579_v29 = vunpack.i.l.bf16 %v3578_v19  ;;  %v753_v34 = vmul.f32 1.442695, %v746_v23 }
 0x305   : > { %v3585_v44 = vunpack.i.h.bf16 %v3583_v13  ;;  %v3584_v45 = vunpack.i.l.bf16 %v3583_v13 }
 0x306   : > { %3672 = vpow2.f32 %v765_v0  ;;  %v3381_v37 = vpack.c.bf16 %v3580_v27, %v3579_v29 }
 0x307   : > { %v4309_v25 = vpop.permute.xlu1 %1005  ;;  %3674 = vpow2.f32 %v747_v15  ;;  %v1000_v31 = vpop.permute.xlu0 %999  ;;  %v3387_v48 = vpack.c.bf16 %v3585_v44, %v3584_v45 }
 0x308   : > { %3127 = vmatprep.subr.msk.mxu0 %vm516_vm0, %v4309_v25  ;;  %v4315_v30 = vpop.eup %3666  ;;  %3676 = vpow2.f32 %v749_v21 }
 0x309   : > { %3128 = vmatpush3.xpose.msk.msra.mxu0 %vm516_vm0, %v4309_v25  ;;  %v4317_v33 = vpop.eup %3668  ;;  %3113 = vmatprep.mubr.msk.f32.mxu1 %vm516_vm0, %v4315_v30  ;;  %3678 = vpow2.f32 %v751_v26 }
 0x30a   : > { %3114 = vmatmul.mubr.msk.f32.vlgmr.msra.gmra.mrb[8].mxu1 %vm516_vm0, %v4317_v33  ;;  %3680 = vpow2.f32 %v753_v34 }
 0x30b   : > { %v998_v35 = vpop.permute.xlu1 %997  ;;  %3120 = vmatpush3.msra.mxu1 %v4228_v14  ;;  %v1004_v41 = vpop.permute.xlu0 %1003 }
 0x30c   : > { %3129 = vmatprep.mubr.msk.f32.mxu0 %vm516_vm0, %v998_v35  ;;  %v4324_v39 = vpop.eup %3670  ;;  %3383 = vmatprep.subr.msk.bf16.mxu1 %vm4244_vm1, %v3381_v37 }
 0x30d   : > { %3130 = vmatmul.mubr.msk.f32.vlgmr.msra.gmra.mrb[12].mxu0 %vm516_vm0, %v1000_v31  ;;  %3116 = vmatprep.mubr.msk.f32.mxu1 %vm516_vm0, %v4324_v39 }
 0x30f   : > { %v1002_v40 = vpop.permute.xlu1 %1001 }
 0x310   : > { %3132 = vmatprep.mubr.msk.f32.mxu0 %vm516_vm0, %v1002_v40  ;;  %v4333_v42 = vpop.eup %3672 }
 0x311   : > { %3133 = vmatmul.mubr.msk.f32.gmra.mrb[14].mxu0 %vm516_vm0, %v1004_v41  ;;  %v4336_v43 = vpop.eup %3674  ;;  %3117 = vmatmul.mubr.msk.f32.gmra.mrb[10].mxu1 %vm516_vm0, %v4333_v42 }
 0x312   : > { %3121 = vmatprep.mubr.msk.f32.mxu1 %vm714_vm2, %v4336_v43  ;;  %v4342_v46 = vpop.eup %3676 }
 0x313   : > { %v4344_v47 = vpop.eup %3678  ;;  %v3588_v49 = vpop.permute.xlu1 %3587 }
 0x314   : > { %v4354_v50 = vpop.eup %3680  ;;  %v3590_v51 = vunpack.i.h.bf16 %v3588_v49  ;;  %v3589_v52 = vunpack.i.l.bf16 %v3588_v49 }
 0x315   : > { %3122 = vmatmul.mubr.msk.f32.vlgmr.msra.gmra.mrb[8].mxu1 %vm714_vm2, %v4342_v46 }
 0x316   : > { %3386 = vmatpush3.bf16.xpose.msk.msra.mxu1 %vm4244_vm1, %v3381_v37  ;;  %3124 = vmatprep.mubr.msk.f32.mxu1 %vm714_vm2, %v4344_v47  ;;  %v3393_v53 = vpack.c.bf16 %v3590_v51, %v3589_v52 }
 0x317   : > { %3389 = vmatprep.subr.msk.bf16.mxu1 %vm4244_vm1, %v3387_v48 }
 0x319   : > { %3125 = vmatmul.mubr.msk.f32.gmra.mrb[10].mxu1 %vm714_vm2, %v4354_v50 }
 0x31a   : > { %3143 = vmatprep.mubr.msk.f32.mxu1 %vm516_vm0, %v998_v35 }
 0x31e   : > { %3392 = vmatpush3.bf16.xpose.msk.msra.mxu1 %vm4244_vm1, %v3387_v48 }
 0x31f   : > { %3394 = vmatprep.subr.bf16.mxu1 %v3393_v53 }
 0x325   : > { %3144 = vmatmul.mubr.msk.f32.vlgmr.msra.gmra.mrb[12].mxu1 %vm516_vm0, %v1000_v31 }
 0x326   : > { %3146 = vmatprep.mubr.msk.f32.mxu1 %vm516_vm0, %v1002_v40  ;;  %3396 = vmatpush3.bf16.msra.mxu1 %v3393_v53 }
 0x329   : > { %3147 = vmatmul.mubr.msk.f32.gmra.mrb[14].mxu1 %vm516_vm0, %v1004_v41 }
 0x3e0   : > { %v4364_v54 = vpop.f32.mrb[12].mxu0 }
 0x3e1   : > { %v4366_v55 = vpop.f32.mrb[13].mxu0  ;;  %v1206_v56 = vsel %vm714_vm2, %v4364_v54, -inf }
 0x3e2   : > { %1207 = vmax.xlane.f32.xlu0 %v1206_v56  ;;  %v1203_v57 = vsel %vm714_vm2, %v4366_v55, -inf }
 0x3e3   : > { %1204 = vmax.xlane.f32.xlu1 %v1203_v57 }
 0x3e4   : > { %v4372_v58 = vpop.f32.mrb[14].mxu0 }
 0x3e5   : > { %v4374_v59 = vpop.f32.mrb[15].mxu0  ;;  %v1212_v60 = vsel %vm714_vm2, %v4372_v58, -inf }
 0x3e6   : > { %v1209_v63 = vsel %vm714_vm2, %v4374_v59, -inf }
 0x3e7   : > { %1213 = vmax.xlane.f32.xlu1 %v1212_v60 }
 0x3e8   : > { %v4378_v61 = vpop.f32.mrb[8].mxu1 }
 0x3e9   : > { %v4380_v62 = vpop.f32.mrb[9].mxu1 }
 0x3eb   : > { %1210 = vmax.xlane.f32.xlu1 %v1209_v63 }
 0x3ec   : > { %v4384_v1 = vpop.f32.mrb[10].mxu1 }
 0x3ed   : > { %v4386_v2 = vpop.f32.mrb[11].mxu1 }
 0x3f8   : > { %v3145_v3 = vpop.f32.mrb[12].mxu1 }
 0x3f9   : > { %v1184_v4 = vpop.f32.mrb[13].mxu1  ;;  %v1218_v5 = vsel %vm516_vm0, %v3145_v3, -inf }
 0x3fa   : > { %1219 = vmax.xlane.f32.xlu0 %v1218_v5  ;;  %v1215_v8 = vsel %vm516_vm0, %v1184_v4, -inf }
 0x3fc   : > { %3597 = vrot.lane.b32.xlu1 %v4248_v22, %s3962_s26  ;;  %v3148_v6 = vpop.f32.mrb[14].mxu1 }
 0x3fd   : > { %v1194_v7 = vpop.f32.mrb[15].mxu1  ;;  %v1224_v9 = vsel %vm516_vm0, %v3148_v6, -inf }
 0x3fe   : > { %1216 = vmax.xlane.f32.xlu0 %v1215_v8  ;;  %v1221_v10 = vsel %vm516_vm0, %v1194_v7, -inf }
 0x400   : > { %3602 = vrot.lane.b32.xlu1 %v4262_v32, %s3962_s26 }
 0x402   : > { %1225 = vmax.xlane.f32.xlu0 %v1224_v9 }
 0x404   : > { %1510 = vrot.lane.b32.xlu1 %v4228_v14, %s3962_s26 }
 0x406   : > { %1222 = vmax.xlane.f32.xlu0 %v1221_v10 }
 0x408   : > { %1504 = vrot.lane.b32.xlu1 %v4240_v18, %s3962_s26 }
 0x40c   : > { %1508 = vrot.lane.b32.xlu1 %v4260_v28, %s3962_s26 }
 0x410   : > { %3612 = vrot.lane.b32.xlu1 %v4279_v38, %s3962_s26 }
 0x41c   : > { %3592 = vrot.lane.b32.xlu0 %v4279_v38, %s3961_s24 }
 0x420   : > { %1502 = vrot.lane.b32.xlu0 %v4234_v16, %s3962_s26 }
 0x424   : > { %1506 = vrot.lane.b32.xlu0 %v4254_v24, %s3962_s26 }
 0x46f   : > { %v1208_v0 = vpop.xlane.xlu0 %1207 }
 0x470   : > { %v1205_v11 = vpop.xlane.xlu1 %1204 }
 0x474   : > { %v1214_v12 = vpop.xlane.xlu1 %1213 }
 0x478   : > { %v1211_v13 = vpop.xlane.xlu1 %1210 }
 0x47c   : > { %v3598_v15 = vpop.permute.xlu1 %3597 }
 0x47d   : > { %v3600_v8 = vunpack.i.h.bf16 %v3598_v15  ;;  %v3599_v9 = vunpack.i.l.bf16 %v3598_v15 }
 0x480   : > { %v4410_v17 = vpop.permute.xlu1 %3602 }
 0x484   : > { %v4412_v19 = vpop.permute.xlu1 %1510 }
 0x485   : > { %3171 = vmatprep.subr.msk.mxu0 %vm516_vm0, %v4412_v19 }
 0x486   : > { %3172 = vmatpush3.xpose.msk.msra.mxu0 %vm516_vm0, %v4412_v19 }
 0x487   : > { %v1220_v21 = vpop.xlane.xlu0 %1219 }
 0x488   : > { %v1228_v23 = vmax.f32 %v1208_v0, %v1220_v21 }
 0x48a   : > { %v1244_v29 = vsub.f32 %v3145_v3, %v1228_v23  ;;  %v1232_v51 = vsub.f32 %v4364_v54, %v1228_v23  ;;  %v3605_v23 = vunpack.i.h.bf16 %v4410_v17 }
 0x48b   : > { %v1217_v26 = vpop.xlane.xlu0 %1216 }
 0x48c   : > { %v1227_v27 = vmax.f32 %v1205_v11, %v1217_v26  ;;  %v1249_v40 = vmul.f32 1.442695, %v1244_v29  ;;  %v1237_v10 = vmul.f32 1.442695, %v1232_v51  ;;  %v3604_v26 = vunpack.i.l.bf16 %v4410_v17 }
 0x48e   : > { %v1243_v31 = vsub.f32 %v1184_v4, %v1227_v27  ;;  %v1231_v48 = vsub.f32 %v4366_v55, %v1227_v27  ;;  %v1505_v4 = vpop.permute.xlu1 %1504  ;;  %v3407_v29 = vpack.c.bf16 %v3605_v23, %v3604_v26 }
 0x48f   : > { %v1226_v34 = vpop.xlane.xlu0 %1225 }
 0x490   : > { %v1247_v35 = vmul.f32 1.442695, %v1243_v31  ;;  %v1230_v37 = vmax.f32 %v1214_v12, %v1226_v34  ;;  %v1235_v63 = vmul.f32 1.442695, %v1231_v48 }
 0x492   : > { %3682 = vpow2.f32 %v1247_v35  ;;  %v1246_v44 = vsub.f32 %v3148_v6, %v1230_v37  ;;  %v1234_v55 = vsub.f32 %v4372_v58, %v1230_v37  ;;  %v3401_v58 = vpack.c.bf16 %v3600_v8, %v3599_v9  ;;  %v1509_v12 = vpop.permute.xlu1 %1508 }
 0x493   : > { %v1223_v41 = vpop.xlane.xlu0 %1222  ;;  %3684 = vpow2.f32 %v1249_v40 }
 0x494   : > { %v1229_v45 = vmax.f32 %v1211_v13, %v1223_v41  ;;  %v1253_v53 = vmul.f32 1.442695, %v1246_v44  ;;  %v1241_v13 = vmul.f32 1.442695, %v1234_v55 }
 0x496   : > { %v1245_v49 = vsub.f32 %v1194_v7, %v1229_v45  ;;  %v1233_v3 = vsub.f32 %v4374_v59, %v1229_v45 }
 0x497   : > { %v3593_v52 = vpop.permute.xlu0 %3592 }
 0x498   : > { %v1251_v56 = vmul.f32 1.442695, %v1245_v49  ;;  %v3595_v57 = vunpack.i.h.bf16 %v3593_v52  ;;  %v3594_v60 = vunpack.i.l.bf16 %v3593_v52  ;;  %v1239_v7 = vmul.f32 1.442695, %v1233_v3 }
 0x49a   : > { %v3397_v5 = vpack.c.bf16 %v3595_v57, %v3594_v60  ;;  %3686 = vpow2.f32 %v1251_v56 }
 0x49b   : > { %v1503_v6 = vpop.permute.xlu0 %1502  ;;  %3688 = vpow2.f32 %v1253_v53 }
 0x49c   : > { %3398 = vmatprep.subr.bf16.mxu1 %v3397_v5  ;;  %3173 = vmatprep.mubr.msk.f32.mxu0 %vm516_vm0, %v1503_v6  ;;  %v4423_v54 = vpop.eup %3682  ;;  %3690 = vpow2.f32 %v1235_v63 }
 0x49d   : > { %3400 = vmatpush3.bf16.msra.mxu1 %v3397_v5  ;;  %3174 = vmatmul.mubr.msk.f32.vlgmr.msra.gmra.mrb[16].mxu0 %vm516_vm0, %v1505_v4  ;;  %v4429_v59 = vpop.eup %3684  ;;  %3692 = vpow2.f32 %v1237_v10 }
 0x49e   : > { %3157 = vmatprep.mubr.msk.f32.mxu1 %vm516_vm0, %v4423_v54  ;;  %3163 = vmatprep.subr.mxu1 %v4309_v25  ;;  %3694 = vpow2.f32 %v1239_v7 }
 0x49f   : > { %v1507_v11 = vpop.permute.xlu0 %1506  ;;  %3696 = vpow2.f32 %v1241_v13 }
 0x4a0   : > { %3158 = vmatmul.mubr.msk.f32.vlgmr.msra.gmra.mrb[16].mxu1 %vm516_vm0, %v4429_v59  ;;  %3176 = vmatprep.mubr.msk.f32.mxu0 %vm516_vm0, %v1507_v11 }
 0x4a1   : > { %3164 = vmatpush3.msra.mxu1 %v4309_v25  ;;  %3177 = vmatmul.mubr.msk.f32.gmra.mrb[18].mxu0 %vm516_vm0, %v1509_v12 }
 0x4a2   : > { %3403 = vmatprep.subr.msk.bf16.mxu1 %vm4244_vm1, %v3401_v58 }
 0x4a4   : > { %v4438_v15 = vpop.eup %3686 }
 0x4a5   : > { %v4440_v0 = vpop.eup %3688  ;;  %3160 = vmatprep.mubr.msk.f32.mxu1 %vm516_vm0, %v4438_v15 }
 0x4a6   : > { %v4444_v21 = vpop.eup %3690  ;;  %3161 = vmatmul.mubr.msk.f32.gmra.mrb[18].mxu1 %vm516_vm0, %v4440_v0 }
 0x4a7   : > { %3165 = vmatprep.mubr.msk.f32.mxu1 %vm714_vm2, %v4444_v21  ;;  %v4452_v25 = vpop.eup %3692 }
 0x4a8   : > { %v4454_v27 = vpop.eup %3694 }
 0x4a9   : > { %v4464_v17 = vpop.eup %3696 }
 0x4aa   : > { %3166 = vmatmul.mubr.msk.f32.vlgmr.msra.gmra.mrb[16].mxu1 %vm714_vm2, %v4452_v25 }
 0x4ab   : > { %3406 = vmatpush3.bf16.xpose.msk.msra.mxu1 %vm4244_vm1, %v3401_v58  ;;  %3168 = vmatprep.mubr.msk.f32.mxu1 %vm714_vm2, %v4454_v27 }
 0x4ac   : > { %3409 = vmatprep.subr.msk.bf16.mxu1 %vm4244_vm1, %v3407_v29 }
 0x4ae   : > { %3169 = vmatmul.mubr.msk.f32.gmra.mrb[18].mxu1 %vm714_vm2, %v4464_v17 }
 0x4af   : > { %3187 = vmatprep.mubr.msk.f32.mxu1 %vm516_vm0, %v1503_v6 }
 0x4b3   : > { %3412 = vmatpush3.bf16.xpose.msk.msra.mxu1 %vm4244_vm1, %v3407_v29 }
 0x4ba   : > { %3188 = vmatmul.mubr.msk.f32.vlgmr.msra.gmra.mrb[20].mxu1 %vm516_vm0, %v1505_v4 }
 0x4bb   : > { %3190 = vmatprep.mubr.msk.f32.mxu1 %vm516_vm0, %v1507_v11 }
 0x4be   : > { %3191 = vmatmul.mubr.msk.f32.gmra.mrb[22].mxu1 %vm516_vm0, %v1509_v12 }
 0x570   : > { %v4474_v31 = vpop.f32.mrb[16].mxu0 }
 0x571   : > { %v4476_v34 = vpop.f32.mrb[17].mxu0  ;;  %v1711_v41 = vsel %vm714_vm2, %v4474_v31, -inf }
 0x572   : > { %v1708_v35 = vsel %vm714_vm2, %v4476_v34, -inf }
 0x573   : > { %1709 = vmax.xlane.f32.xlu0 %v1708_v35 }
 0x574   : > { %v4480_v37 = vpop.f32.mrb[18].mxu0 }
 0x575   : > { %v4482_v40 = vpop.f32.mrb[19].mxu0  ;;  %v1717_v48 = vsel %vm714_vm2, %v4480_v37, -inf }
 0x576   : > { %v1714_v44 = vsel %vm714_vm2, %v4482_v40, -inf }
 0x577   : > { %1712 = vmax.xlane.f32.xlu0 %v1711_v41 }
 0x57b   : > { %1715 = vmax.xlane.f32.xlu0 %v1714_v44 }
 0x57d   : > { %v4488_v45 = vpop.f32.mrb[16].mxu1 }
 0x57e   : > { %v4492_v49 = vpop.f32.mrb[17].mxu1 }
 0x57f   : > { %1718 = vmax.xlane.f32.xlu0 %v1717_v48 }
 0x581   : > { %v4494_v51 = vpop.f32.mrb[18].mxu1 }
 0x582   : > { %v4496_v52 = vpop.f32.mrb[19].mxu1 }
 0x58d   : > { %v3189_v53 = vpop.f32.mrb[20].mxu1 }
 0x58e   : > { %v1689_v56 = vpop.f32.mrb[21].mxu1  ;;  %v1723_v57 = vsel %vm516_vm0, %v3189_v53, -inf }
 0x58f   : > { %1724 = vmax.xlane.f32.xlu0 %v1723_v57  ;;  %v1720_v60 = vsel %vm516_vm0, %v1689_v56, -inf }
 0x590   : > { %1721 = vmax.xlane.f32.xlu1 %v1720_v60 }
 0x591   : > { %v3192_v63 = vpop.f32.mrb[22].mxu1 }
 0x592   : > { %v1699_v3 = vpop.f32.mrb[23].mxu1  ;;  %v1729_v4 = vsel %vm516_vm0, %v3192_v63, -inf }
 0x593   : > { %v1726_v5 = vsel %vm516_vm0, %v1699_v3, -inf }
 0x594   : > { %1730 = vmax.xlane.f32.xlu1 %v1729_v4 }
 0x598   : > { %1727 = vmax.xlane.f32.xlu1 %v1726_v5 }
 0x5a5   : > { %3607 = vrot.lane.b32.xlu0 %v4276_v36, %s3962_s26 }
 0x5a9   : > { %2011 = vrot.lane.b32.xlu0 %v4228_v14, %s3963_s6  ;;  %3617 = vrot.lane.b32.xlu1 %v4248_v22, %s3963_s6  ;;  %v3613_v22 = vpop.permute.xlu1 %3612 }
 0x5aa   : > { %v3615_v12 = vunpack.i.h.bf16 %v3613_v22 }
 0x5ad   : > { %2005 = vrot.lane.b32.xlu0 %v4240_v18, %s3963_s6  ;;  %3622 = vrot.lane.b32.xlu1 %v4262_v32, %s3963_s6 }
 0x5b1   : > { %2009 = vrot.lane.b32.xlu0 %v4260_v28, %s3963_s6  ;;  %2003 = vrot.lane.b32.xlu1 %v4234_v16, %s3963_s6  ;;  %v3614_v28 = vunpack.i.l.bf16 %v3613_v22 }
 0x5b3   : > { %v3417_v44 = vpack.c.bf16 %v3615_v12, %v3614_v28 }
 0x5b5   : > { %2007 = vrot.lane.b32.xlu1 %v4254_v24, %s3963_s6 }
 0x600   : > { %v1710_v8 = vpop.xlane.xlu0 %1709 }
 0x604   : > { %v1713_v14 = vpop.xlane.xlu0 %1712 }
 0x608   : > { %v1716_v6 = vpop.xlane.xlu0 %1715 }
 0x60c   : > { %v1719_v9 = vpop.xlane.xlu0 %1718 }
 0x61c   : > { %v1725_v10 = vpop.xlane.xlu0 %1724 }
 0x61d   : > { %v1733_v55 = vmax.f32 %v1713_v14, %v1725_v10  ;;  %v1722_v18 = vpop.xlane.xlu1 %1721 }
 0x61e   : > { %v1732_v7 = vmax.f32 %v1710_v8, %v1722_v18 }
 0x61f   : > { %v1749_v11 = vsub.f32 %v3189_v53, %v1733_v55  ;;  %v1737_v4 = vsub.f32 %v4474_v31, %v1733_v55 }
 0x620   : > { %v1748_v32 = vsub.f32 %v1689_v56, %v1732_v7  ;;  %v3608_v58 = vpop.permute.xlu0 %3607  ;;  %v1736_v57 = vsub.f32 %v4476_v34, %v1732_v7 }
 0x621   : > { %v3610_v13 = vunpack.i.h.bf16 %v3608_v58  ;;  %v3609_v23 = vunpack.i.l.bf16 %v3608_v58  ;;  %v1731_v16 = vpop.xlane.xlu1 %1730  ;;  %v1754_v24 = vmul.f32 1.442695, %v1749_v11 }
 0x622   : > { %v1752_v26 = vmul.f32 1.442695, %v1748_v32  ;;  %v1735_v29 = vmax.f32 %v1719_v9, %v1731_v16  ;;  %v1740_v9 = vmul.f32 1.442695, %v1736_v57 }
 0x623   : > { %v3413_v35 = vpack.c.bf16 %v3610_v13, %v3609_v23 }
 0x624   : > { %v4518_v41 = vpop.permute.xlu0 %2011  ;;  %3698 = vpow2.f32 %v1752_v26  ;;  %v1751_v53 = vsub.f32 %v3192_v63, %v1735_v29  ;;  %v1742_v63 = vmul.f32 1.442695, %v1737_v4  ;;  %v1739_v10 = vsub.f32 %v4480_v37, %v1735_v29 }
 0x625   : > { %3414 = vmatprep.subr.bf16.mxu0 %v3413_v35  ;;  %v1728_v48 = vpop.xlane.xlu1 %1727  ;;  %3215 = vmatprep.subr.msk.mxu1 %vm516_vm0, %v4518_v41  ;;  %3700 = vpow2.f32 %v1754_v24 }
 0x626   : > { %v1734_v56 = vmax.f32 %v1716_v6, %v1728_v48  ;;  %3416 = vmatpush3.bf16.msra.mxu0 %v3413_v35  ;;  %3216 = vmatpush3.xpose.msk.msra.mxu1 %vm516_vm0, %v4518_v41  ;;  %v1758_v8 = vmul.f32 1.442695, %v1751_v53  ;;  %v1746_v11 = vmul.f32 1.442695, %v1739_v10 }
 0x627   : > { %3418 = vmatprep.subr.bf16.mxu0 %v3417_v44 }
 0x628   : > { %v1750_v60 = vsub.f32 %v1699_v3, %v1734_v56  ;;  %v1738_v22 = vsub.f32 %v4482_v40, %v1734_v56  ;;  %v2006_v55 = vpop.permute.xlu0 %2005 }
 0x629   : > { %v3618_v5 = vpop.permute.xlu1 %3617 }
 0x62a   : > { %v1756_v14 = vmul.f32 1.442695, %v1750_v60  ;;  %3420 = vmatpush3.bf16.msra.mxu0 %v3417_v44  ;;  %v3620_v34 = vunpack.i.h.bf16 %v3618_v5  ;;  %v3619_v18 = vunpack.i.l.bf16 %v3618_v5  ;;  %v1744_v3 = vmul.f32 1.442695, %v1738_v22 }
 0x62b   : > { %3207 = vmatprep.subr.mxu0 %v4412_v19 }
 0x62c   : > { %3702 = vpow2.f32 %v1756_v14  ;;  %v3421_v32 = vpack.c.bf16 %v3620_v34, %v3619_v18  ;;  %v2010_v58 = vpop.permute.xlu0 %2009 }
 0x62d   : > { %v3623_v6 = vpop.permute.xlu1 %3622  ;;  %3704 = vpow2.f32 %v1758_v8 }
 0x62e   : > { %3706 = vpow2.f32 %v1740_v9  ;;  %v4529_v31 = vpop.eup %3698  ;;  %v3625_v13 = vunpack.i.h.bf16 %v3623_v6  ;;  %v3624_v23 = vunpack.i.l.bf16 %v3623_v6 }
 0x62f   : > { %v4531_v7 = vpop.eup %3700  ;;  %3201 = vmatprep.mubr.msk.f32.mxu0 %vm516_vm0, %v4529_v31  ;;  %3708 = vpow2.f32 %v1742_v63 }
 0x630   : > { %3202 = vmatmul.mubr.msk.f32.vlgmr.msra.gmra.mrb[20].mxu0 %vm516_vm0, %v4531_v7  ;;  %3710 = vpow2.f32 %v1744_v3  ;;  %v3427_v29 = vpack.c.bf16 %v3625_v13, %v3624_v23 }
 0x631   : > { %v2004_v40 = vpop.permute.xlu1 %2003  ;;  %3208 = vmatpush3.msra.mxu0 %v4412_v19  ;;  %3712 = vpow2.f32 %v1746_v11 }
 0x632   : > { %3217 = vmatprep.mubr.msk.f32.mxu1 %vm516_vm0, %v2004_v40  ;;  %3423 = vmatprep.subr.msk.bf16.mxu0 %vm4244_vm1, %v3421_v32 }
 0x633   : > { %3218 = vmatmul.mubr.msk.f32.vlgmr.msra.gmra.mrb[24].mxu1 %vm516_vm0, %v2006_v55 }
 0x635   : > { %v2008_v37 = vpop.permute.xlu1 %2007 }
 0x636   : > { %3220 = vmatprep.mubr.msk.f32.mxu1 %vm516_vm0, %v2008_v37  ;;  %v4543_v12 = vpop.eup %3702 }
 0x637   : > { %3221 = vmatmul.mubr.msk.f32.gmra.mrb[26].mxu1 %vm516_vm0, %v2010_v58  ;;  %v4546_v28 = vpop.eup %3704  ;;  %3204 = vmatprep.mubr.msk.f32.mxu0 %vm516_vm0, %v4543_v12 }
 0x638   : > { %v3707_v19 = vpop.eup %3706  ;;  %3205 = vmatmul.mubr.msk.f32.gmra.mrb[22].mxu0 %vm516_vm0, %v4546_v28 }
 0x639   : > { %3209 = vmatprep.mubr.msk.f32.mxu0 %vm714_vm2, %v3707_v19  ;;  %v3709_v16 = vpop.eup %3708 }
 0x63a   : > { %v3711_v26 = vpop.eup %3710  ;;  %v1763_v11 = vsel %vm714_vm2, %v3709_v16, 0.0 }
 0x63b   : > { %v3713_v24 = vpop.eup %3712 }
 0x63c   : > { %3210 = vmatmul.mubr.msk.f32.vlgmr.msra.gmra.mrb[20].mxu0 %vm714_vm2, %v3709_v16 }
 0x63d   : > { %3426 = vmatpush3.bf16.xpose.msk.msra.mxu0 %vm4244_vm1, %v3421_v32  ;;  %3212 = vmatprep.mubr.msk.f32.mxu0 %vm714_vm2, %v3711_v26  ;;  %v1261_v32 = vsel %vm714_vm2, %v4454_v27, 0.0  ;;  %v1772_v27 = vsel %vm516_vm0, %v4529_v31, 0.0  ;;  %v1781_v31 = vsel %vm516_vm0, %v4546_v28, 0.0 }
 0x63e   : > { %3429 = vmatprep.subr.msk.bf16.mxu0 %vm4244_vm1, %v3427_v29 }
 0x640   : > { %3213 = vmatmul.mubr.msk.f32.gmra.mrb[22].mxu0 %vm714_vm2, %v3713_v24 }
 0x641   : > { %3231 = vmatprep.mubr.msk.f32.mxu0 %vm516_vm0, %v2004_v40  ;;  %v1760_v40 = vsel %vm714_vm2, %v3707_v19, 0.0  ;;  %v1273_v19 = vsel %vm516_vm0, %v4438_v15, 0.0 }
 0x645   : > { %3432 = vmatpush3.bf16.xpose.msk.msra.mxu0 %vm4244_vm1, %v3427_v29 }
 0x64c   : > { %3232 = vmatmul.mubr.msk.f32.vlgmr.msra.gmra.mrb[24].mxu0 %vm516_vm0, %v2006_v55  ;;  %v1258_v55 = vsel %vm714_vm2, %v4452_v25, 0.0  ;;  %v1769_v25 = vsel %vm714_vm2, %v3713_v24, 0.0 }
 0x64d   : > { %3234 = vmatprep.mubr.msk.f32.mxu0 %vm516_vm0, %v2008_v37  ;;  %v1267_v37 = vsel %vm516_vm0, %v4423_v54, 0.0  ;;  %v1276_v54 = vsel %vm516_vm0, %v4440_v0, 0.0 }
 0x650   : > { %3235 = vmatmul.mubr.msk.f32.gmra.mrb[26].mxu0 %vm516_vm0, %v2010_v58  ;;  %v1270_v58 = vsel %vm516_vm0, %v4429_v59, 0.0  ;;  %v1778_v59 = vsel %vm516_vm0, %v4543_v12, 0.0 }
 0x706   : > { %v4566_v35 = vpop.f32.mrb[24].mxu1 }
 0x707   : > { %v4568_v44 = vpop.f32.mrb[25].mxu1  ;;  %v2212_v48 = vsel %vm714_vm2, %v4566_v35, -inf }
 0x708   : > { %2213 = vmax.xlane.f32.xlu0 %v2212_v48  ;;  %v2209_v53 = vsel %vm714_vm2, %v4568_v44, -inf }
 0x709   : > { %2210 = vmax.xlane.f32.xlu1 %v2209_v53 }
 0x70a   : > { %v4574_v20 = vpop.f32.mrb[26].mxu1 }
 0x70b   : > { %v4576_v56 = vpop.f32.mrb[27].mxu1  ;;  %v2218_v57 = vsel %vm714_vm2, %v4574_v20, -inf }
 0x70c   : > { %v2215_v4 = vsel %vm714_vm2, %v4576_v56, -inf }
 0x70d   : > { %2219 = vmax.xlane.f32.xlu1 %v2218_v57 }
 0x70f   : > { %v4580_v60 = vpop.f32.mrb[20].mxu0 }
 0x710   : > { %v4584_v5 = vpop.f32.mrb[21].mxu0 }
 0x711   : > { %2216 = vmax.xlane.f32.xlu1 %v2215_v4 }
 0x713   : > { %v4586_v8 = vpop.f32.mrb[22].mxu0 }
 0x714   : > { %v4588_v14 = vpop.f32.mrb[23].mxu0 }
 0x71f   : > { %v3233_v9 = vpop.f32.mrb[24].mxu0 }
 0x720   : > { %v4590_v22 = vpop.f32.mrb[25].mxu0  ;;  %v2224_v63 = vsel %vm516_vm0, %v3233_v9, -inf }
 0x721   : > { %2225 = vmax.xlane.f32.xlu0 %v2224_v63  ;;  %v2221_v34 = vsel %vm516_vm0, %v4590_v22, -inf }
 0x722   : > { %3627 = vrot.lane.b32.xlu1 %v4276_v36, %s3963_s6  ;;  %v1255_v36 = vsel %vm714_vm2, %v4444_v21, 0.0  ;;  %v1766_v21 = vsel %vm714_vm2, %v3711_v26, 0.0 }
 0x723   : > { %v4595_v6 = vpop.f32.mrb[26].mxu0 }
 0x724   : > { %v4597_v10 = vpop.f32.mrb[27].mxu0  ;;  %v2230_v18 = vsel %vm516_vm0, %v4595_v6, -inf }
 0x725   : > { %2222 = vmax.xlane.f32.xlu0 %v2221_v34  ;;  %v2227_v3 = vsel %vm516_vm0, %v4597_v10, -inf }
 0x729   : > { %2231 = vmax.xlane.f32.xlu0 %v2230_v18 }
 0x72d   : > { %2228 = vmax.xlane.f32.xlu0 %v2227_v3 }
 0x743   : > { %3632 = vrot.lane.b32.xlu0 %v4279_v38, %s3963_s6  ;;  %v1264_v38 = vsel %vm714_vm2, %v4464_v17, 0.0  ;;  %v1775_v17 = vsel %vm516_vm0, %v4531_v7, 0.0 }
 0x746   : > { %1256 = vadd.xlane.f32.xlu1 %v1255_v36 }
 0x74a   : > { %1259 = vadd.xlane.f32.xlu1 %v1258_v55 }
 0x74e   : > { %1761 = vadd.xlane.f32.xlu1 %v1760_v40 }
 0x752   : > { %1764 = vadd.xlane.f32.xlu1 %v1763_v11 }
 0x756   : > { %1262 = vadd.xlane.f32.xlu1 %v1261_v32 }
 0x75a   : > { %1265 = vadd.xlane.f32.xlu1 %v1264_v38 }
 0x75e   : > { %1767 = vadd.xlane.f32.xlu1 %v1766_v21 }
 0x762   : > { %1770 = vadd.xlane.f32.xlu1 %v1769_v25  ;;  %1268 = vadd.xlane.f32.xlu0 %v1267_v37 }
 0x766   : > { %1271 = vadd.xlane.f32.xlu0 %v1270_v58 }
 0x76a   : > { %1773 = vadd.xlane.f32.xlu0 %v1772_v27 }
 0x76e   : > { %1776 = vadd.xlane.f32.xlu0 %v1775_v17 }
 0x772   : > { %1274 = vadd.xlane.f32.xlu0 %v1273_v19 }
 0x776   : > { %1277 = vadd.xlane.f32.xlu0 %v1276_v54 }
 0x77a   : > { %1779 = vadd.xlane.f32.xlu0 %v1778_v59 }
 0x77e   : > { %1782 = vadd.xlane.f32.xlu0 %v1781_v31 }
 0x795   : > { %v2214_v24 = vpop.xlane.xlu0 %2213 }
 0x796   : > { %v2211_v13 = vpop.xlane.xlu1 %2210 }
 0x79a   : > { %v2220_v23 = vpop.xlane.xlu1 %2219 }
 0x79e   : > { %v2217_v7 = vpop.xlane.xlu1 %2216 }
 0x7a2   : > { %v3628_v16 = vpop.permute.xlu1 %3627 }
 0x7a3   : > { %v3630_v26 = vunpack.i.h.bf16 %v3628_v16  ;;  %v3629_v29 = vunpack.i.l.bf16 %v3628_v16 }
 0x7a5   : > { %v3433_v15 = vpack.c.bf16 %v3630_v26, %v3629_v29 }
 0x7a7   : > { %3434 = vmatprep.subr.bf16.mxu1 %v3433_v15 }
 0x7a8   : > { %3436 = vmatpush3.bf16.msra.mxu1 %v3433_v15 }
 0x7ae   : > { %v2226_v0 = vpop.xlane.xlu0 %2225 }
 0x7af   : > { %v2234_v48 = vmax.f32 %v2214_v24, %v2226_v0  ;;  %v767_v0 = vsel %vm714_vm2, %v4336_v43, 0.0  ;;  %v785_v43 = vsel %vm516_vm0, %v4324_v39, 0.0 }
 0x7b1   : > { %v2238_v53 = vsub.f32 %v4566_v35, %v2234_v48  ;;  %v2250_v12 = vsub.f32 %v3233_v9, %v2234_v48  ;;  %v779_v48 = vsel %vm516_vm0, %v4315_v30, 0.0  ;;  %v776_v30 = vsel %vm714_vm2, %v4354_v50, 0.0 }
 0x7b2   : > { %v2223_v57 = vpop.xlane.xlu0 %2222 }
 0x7b3   : > { %v2243_v4 = vmul.f32 1.442695, %v2238_v53  ;;  %v2255_v63 = vmul.f32 1.442695, %v2250_v12  ;;  %v2233_v28 = vmax.f32 %v2211_v13, %v2223_v57  ;;  %v770_v53 = vsel %vm714_vm2, %v4342_v46, 0.0 }
 0x7b4   : > { %v782_v12 = vsel %vm516_vm0, %v4317_v33, 0.0  ;;  %v773_v57 = vsel %vm714_vm2, %v4344_v47, 0.0  ;;  %v788_v46 = vsel %vm516_vm0, %v4333_v42, 0.0 }
 0x7b5   : > { %3714 = vpow2.f32 %v2243_v4  ;;  %v2237_v34 = vsub.f32 %v4568_v44, %v2233_v28  ;;  %v2249_v18 = vsub.f32 %v4590_v22, %v2233_v28 }
 0x7b6   : > { %3716 = vpow2.f32 %v2255_v63  ;;  %v2232_v3 = vpop.xlane.xlu0 %2231 }
 0x7b7   : > { %v2241_v36 = vmul.f32 1.442695, %v2237_v34  ;;  %v2253_v55 = vmul.f32 1.442695, %v2249_v18  ;;  %v2236_v40 = vmax.f32 %v2220_v23, %v2232_v3 }
 0x7b9   : > { %3718 = vpow2.f32 %v2241_v36  ;;  %v2240_v11 = vsub.f32 %v4574_v20, %v2236_v40  ;;  %v2252_v35 = vsub.f32 %v4595_v6, %v2236_v40 }
 0x7ba   : > { %3720 = vpow2.f32 %v2253_v55  ;;  %v2229_v9 = vpop.xlane.xlu0 %2228 }
 0x7bb   : > { %v2235_v32 = vmax.f32 %v2217_v7, %v2229_v9  ;;  %v2247_v38 = vmul.f32 1.442695, %v2240_v11  ;;  %v2259_v25 = vmul.f32 1.442695, %v2252_v35 }
 0x7bd   : > { %v2239_v21 = vsub.f32 %v4576_v56, %v2235_v32  ;;  %v2251_v44 = vsub.f32 %v4597_v10, %v2235_v32  ;;  %3722 = vpow2.f32 %v2247_v38 }
 0x7be   : > { %v3633_v22 = vpop.permute.xlu0 %3632 }
 0x7bf   : > { %v3715_v37 = vpop.eup %3714  ;;  %v2245_v58 = vmul.f32 1.442695, %v2239_v21  ;;  %v2257_v27 = vmul.f32 1.442695, %v2251_v44  ;;  %v3635_v17 = vunpack.i.h.bf16 %v3633_v22  ;;  %v3634_v19 = vunpack.i.l.bf16 %v3633_v22 }
 0x7c0   : > { %v3717_v54 = vpop.eup %3716  ;;  %v2264_v20 = vsel %vm714_vm2, %v3715_v37, 0.0 }
 0x7c1   : > { %3724 = vpow2.f32 %v2245_v58  ;;  %v3437_v6 = vpack.c.bf16 %v3635_v17, %v3634_v19  ;;  %2265 = vadd.xlane.f32.xlu1 %v2264_v20  ;;  %v2276_v59 = vsel %vm516_vm0, %v3717_v54, 0.0 }
 0x7c2   : > { %3726 = vpow2.f32 %v2257_v27  ;;  %2277 = vadd.xlane.f32.xlu0 %v2276_v59 }
 0x7c3   : > { %v3719_v56 = vpop.eup %3718  ;;  %3728 = vpow2.f32 %v2259_v25  ;;  %3438 = vmatprep.subr.bf16.mxu1 %v3437_v6 }
 0x7c4   : > { %v3721_v10 = vpop.eup %3720  ;;  %3440 = vmatpush3.bf16.msra.mxu1 %v3437_v6  ;;  %v2261_v31 = vsel %vm714_vm2, %v3719_v56, 0.0 }
 0x7c5   : > { %3245 = vmatprep.mubr.msk.f32.mxu1 %vm516_vm0, %v3721_v10  ;;  %2262 = vadd.xlane.f32.xlu1 %v2261_v31  ;;  %v2273_v13 = vsel %vm516_vm0, %v3721_v10, 0.0 }
 0x7c6   : > { %2274 = vadd.xlane.f32.xlu0 %v2273_v13  ;;  %3251 = vmatprep.subr.mxu1 %v4518_v41 }
 0x7c7   : > { %3246 = vmatmul.mubr.msk.f32.vlgmr.msra.gmra.mrb[28].mxu1 %vm516_vm0, %v3717_v54  ;;  %v3723_v23 = vpop.eup %3722 }
 0x7c8   : > { %3252 = vmatpush3.msra.mxu1 %v4518_v41  ;;  %v2270_v24 = vsel %vm714_vm2, %v3723_v23, 0.0 }
 0x7cb   : > { %v3725_v7 = vpop.eup %3724 }
 0x7cc   : > { %v3727_v16 = vpop.eup %3726  ;;  %v2267_v26 = vsel %vm714_vm2, %v3725_v7, 0.0 }
 0x7cd   : > { %v3729_v29 = vpop.eup %3728  ;;  %3248 = vmatprep.mubr.msk.f32.mxu1 %vm516_vm0, %v3727_v16  ;;  %v2279_v15 = vsel %vm516_vm0, %v3727_v16, 0.0  ;;  %2268 = vadd.xlane.f32.xlu1 %v2267_v26 }
 0x7ce   : > { %2280 = vadd.xlane.f32.xlu0 %v2279_v15  ;;  %3249 = vmatmul.mubr.msk.f32.gmra.mrb[30].mxu1 %vm516_vm0, %v3729_v29  ;;  %v2282_v41 = vsel %vm516_vm0, %v3729_v29, 0.0  ;;  %v2566_v29 = vld [vmem:[#allocation8] sm:$0xff]  ;;  %v2567_v15 = vld [vmem:[#allocation8 + $0x8] sm:$0xff] }
 0x7cf   : > { %3253 = vmatprep.mubr.msk.f32.mxu1 %vm714_vm2, %v3719_v56 }
 0x7d1   : > { %2271 = vadd.xlane.f32.xlu1 %v2270_v24  ;;  %v2568_v24 = vld [vmem:[#allocation8 + $0x10] sm:$0xff] }
 0x7d2   : > { %2283 = vadd.xlane.f32.xlu0 %v2282_v41  ;;  %3254 = vmatmul.mubr.msk.f32.vlgmr.msra.gmra.mrb[28].mxu1 %vm714_vm2, %v3715_v37  ;;  %v2569_v41 = vld [vmem:[#allocation8 + $0x18] sm:$0xff] }
 0x7d3   : > { %3256 = vmatprep.mubr.msk.f32.mxu1 %vm714_vm2, %v3725_v7  ;;  %v1257_v4 = vpop.xlane.xlu1 %1256 }
 0x7d5   : > { %768 = vadd.xlane.f32.xlu1 %v767_v0  ;;  %v2570_v0 = vld [vmem:[#allocation8 + $0x20] sm:$0xff] }
 0x7d6   : > { %780 = vadd.xlane.f32.xlu0 %v779_v48  ;;  %3257 = vmatmul.mubr.msk.f32.gmra.mrb[30].mxu1 %vm714_vm2, %v3723_v23  ;;  %v2571_v48 = vld [vmem:[#allocation8 + $0x28] sm:$0xff] }
 0x7d7   : > { %v1260_v33 = vpop.xlane.xlu1 %1259 }
 0x7d9   : > { %771 = vadd.xlane.f32.xlu1 %v770_v53  ;;  %v3449_v53 = vpack.c.bf16 %v2571_v48, %v2570_v0 }
 0x7da   : > { %783 = vadd.xlane.f32.xlu0 %v782_v12  ;;  %v2573_v12 = vld [vmem:[#allocation8 + $0x38] sm:$0xff] }
 0x7db   : > { %v1762_v63 = vpop.xlane.xlu1 %1761 }
 0x7dd   : > { %774 = vadd.xlane.f32.xlu1 %v773_v57  ;;  %v2574_v57 = vld [vmem:[#allocation8 + $0x40] sm:$0xff] }
 0x7de   : > { %786 = vadd.xlane.f32.xlu0 %v785_v43  ;;  %v2575_v43 = vld [vmem:[#allocation8 + $0x48] sm:$0xff] }
 0x7df   : > { %v1765_v18 = vpop.xlane.xlu1 %1764 }
 0x7e1   : > { %777 = vadd.xlane.f32.xlu1 %v776_v30  ;;  %v3457_v30 = vpack.c.bf16 %v2575_v43, %v2574_v57 }
 0x7e2   : > { %789 = vadd.xlane.f32.xlu0 %v788_v46  ;;  %v2577_v46 = vld [vmem:[#allocation8 + $0x58] sm:$0xff] }
 0x7e3   : > { %v1263_v55 = vpop.xlane.xlu1 %1262 }
 0x7e7   : > { %v1266_v42 = vpop.xlane.xlu1 %1265 }
 0x7eb   : > { %v1768_v37 = vpop.xlane.xlu1 %1767 }
 0x7ef   : > { %v1269_v28 = vpop.xlane.xlu0 %1268  ;;  %v1771_v6 = vpop.xlane.xlu1 %1770 }
 0x7f0   : > { %v1279_v34 = vadd.f32 %v1269_v28, %v1257_v4  ;;  %v2576_v4 = vld [vmem:[#allocation8 + $0x50] sm:$0xff]  ;;  %v2579_v28 = vld [vmem:[#allocation8 + $0x68] sm:$0xff] }
 0x7f2   : > { %3730 = vrcp.f32 %v1279_v34 }
 0x7f3   : > { %v1272_v47 = vpop.xlane.xlu0 %1271 }
 0x7f4   : > { %v1280_v3 = vadd.f32 %v1272_v47, %v1260_v33  ;;  %v3461_v33 = vpack.c.bf16 %v2577_v46, %v2576_v4 }
 0x7f6   : > { %3732 = vrcp.f32 %v1280_v3 }
 0x7f7   : > { %v1774_v39 = vpop.xlane.xlu0 %1773 }
 0x7f8   : > { %v1784_v36 = vadd.f32 %v1774_v39, %v1762_v63  ;;  %v2578_v63 = vld [vmem:[#allocation8 + $0x60] sm:$0xff] }
 0x7f9   : > { %v3465_v34 = vpack.c.bf16 %v2579_v28, %v2578_v63 }
 0x7fa   : > { %3734 = vrcp.f32 %v1784_v36 }
 0x7fb   : > { %v1777_v40 = vpop.xlane.xlu0 %1776 }
 0x7fc   : > { %v1785_v50 = vadd.f32 %v1777_v40, %v1765_v18  ;;  %v3731_v11 = vpop.eup %3730 }
 0x7fd   : > { %v1498_v38 = vmul.f32 %v3731_v11, %v4492_v49 }
 0x7fe   : > { %3736 = vrcp.f32 %v1785_v50 }
 0x7ff   : > { %v1275_v35 = vpop.xlane.xlu0 %1274 }
 0x800   : > { %v3733_v9 = vpop.eup %3732  ;;  %v1281_v32 = vadd.f32 %v1275_v35, %v1263_v55 }
 0x801   : > { %v1499_v21 = vmul.f32 %v3733_v9, %v4488_v45  ;;  %v2580_v9 = vld [vmem:[#allocation8 + $0x70] sm:$0xff] }
 0x802   : > { %3738 = vrcp.f32 %v1281_v32  ;;  %v2581_v32 = vld [vmem:[#allocation8 + $0x78] sm:$0xff] }
 0x803   : > { %v1278_v44 = vpop.xlane.xlu0 %1277  ;;  %v3636_v25 = vpack.i.bf16 %v1499_v21, %v1498_v38  ;;  %v3469_v21 = vpack.c.bf16 %v2581_v32, %v2580_v9 }
 0x804   : > { %v1282_v22 = vadd.f32 %v1278_v44, %v1266_v42  ;;  %v3735_v58 = vpop.eup %3734 }
 0x805   : > { %3637 = vrot.lane.b32.xlu1 %v3636_v25, %s3963_s6  ;;  %v1999_v54 = vmul.f32 %v3735_v58, %v4584_v5 }
 0x806   : > { %3740 = vrcp.f32 %v1282_v22 }
 0x807   : > { %v1780_v27 = vpop.xlane.xlu0 %1779 }
 0x808   : > { %v3737_v17 = vpop.eup %3736  ;;  %v1786_v19 = vadd.f32 %v1780_v27, %v1768_v37 }
 0x809   : > { %v2000_v20 = vmul.f32 %v3737_v17, %v4580_v60 }
 0x80a   : > { %3742 = vrcp.f32 %v1786_v19 }
 0x80b   : > { %v1783_v49 = vpop.xlane.xlu0 %1782  ;;  %v3641_v59 = vpack.i.bf16 %v2000_v20, %v1999_v54 }
 0x80c   : > { %v1787_v45 = vadd.f32 %v1783_v49, %v1771_v6  ;;  %v3739_v56 = vpop.eup %3738 }
 0x80d   : > { %3642 = vrot.lane.b32.xlu0 %v3641_v59, %s3962_s26  ;;  %v1500_v31 = vmul.f32 %v3739_v56, %v4496_v52  ;;  %v3441_v52 = vpack.c.bf16 %v2567_v15, %v2566_v29 }
 0x80e   : > { %3744 = vrcp.f32 %v1787_v45 }
 0x80f   : > { %3442 = vmatprep.subr.bf16.mxu0 %v3441_v52 }
 0x810   : > { %v3741_v10 = vpop.eup %3740  ;;  %3444 = vmatpush3.bf16.msra.mxu0 %v3441_v52 }
 0x811   : > { %v1501_v13 = vmul.f32 %v3741_v10, %v4494_v51  ;;  %v3445_v51 = vpack.c.bf16 %v2569_v41, %v2568_v24 }
 0x813   : > { %v3646_v23 = vpack.i.bf16 %v1501_v13, %v1500_v31  ;;  %3446 = vmatprep.subr.bf16.mxu0 %v3445_v51 }
 0x814   : > { %v3743_v5 = vpop.eup %3742  ;;  %3448 = vmatpush3.bf16.msra.mxu0 %v3445_v51 }
 0x815   : > { %3647 = vrot.lane.b32.xlu1 %v3646_v23, %s3963_s6  ;;  %v4686_v60 = vmul.f32 %v3743_v5, %v4588_v14  ;;  %v2572_v14 = vld [vmem:[#allocation8 + $0x30] sm:$0xff]  ;;  %3450 = vmatprep.subr.bf16.mxu0 %v3449_v53 }
 0x818   : > { %v3745_v7 = vpop.eup %3744  ;;  %3452 = vmatpush3.bf16.msra.mxu0 %v3449_v53 }
 0x819   : > { %v4689_v16 = vmul.f32 %v3745_v7, %v4586_v8  ;;  %v3453_v8 = vpack.c.bf16 %v2573_v12, %v2572_v14 }
 0x81b   : > { %v3656_v26 = vpack.i.bf16 %v4689_v16, %v4686_v60  ;;  %3454 = vmatprep.subr.bf16.mxu0 %v3453_v8 }
 0x81c   : > { %3456 = vmatpush3.bf16.msra.mxu0 %v3453_v8 }
 0x81d   : > { %3458 = vmatprep.subr.bf16.mxu0 %v3457_v30 }
 0x820   : > { %3460 = vmatpush3.bf16.msra.mxu0 %v3457_v30 }
 0x821   : > { %3462 = vmatprep.subr.bf16.mxu0 %v3461_v33 }
 0x824   : > { %3464 = vmatpush3.bf16.msra.mxu0 %v3461_v33 }
 0x825   : > { %3466 = vmatprep.subr.bf16.mxu0 %v3465_v34 }
 0x828   : > { %3468 = vmatpush3.bf16.msra.mxu0 %v3465_v34 }
 0x829   : > { %3470 = vmatprep.subr.bf16.mxu0 %v3469_v21 }
 0x82c   : > { %3472 = vmatpush3.bf16.msra.mxu0 %v3469_v21 }
 0x84e   : > { %v2266_v18 = vpop.xlane.xlu1 %2265 }
 0x84f   : > { %v2278_v47 = vpop.xlane.xlu0 %2277 }
 0x850   : > { %v2286_v40 = vadd.f32 %v2278_v47, %v2266_v18 }
 0x852   : > { %v2263_v3 = vpop.xlane.xlu1 %2262  ;;  %3746 = vrcp.f32 %v2286_v40 }
 0x853   : > { %v2275_v39 = vpop.xlane.xlu0 %2274 }
 0x854   : > { %v2285_v50 = vadd.f32 %v2275_v39, %v2263_v3 }
 0x856   : > { %3748 = vrcp.f32 %v2285_v50 }
 0x85a   : > { %v2269_v36 = vpop.xlane.xlu1 %2268 }
 0x85b   : > { %v2281_v55 = vpop.xlane.xlu0 %2280 }
 0x85c   : > { %v2287_v38 = vadd.f32 %v2281_v55, %v2269_v36  ;;  %v3747_v44 = vpop.eup %3746 }
 0x85e   : > { %v2272_v11 = vpop.xlane.xlu1 %2271 }
 0x85f   : > { %v2284_v42 = vpop.xlane.xlu0 %2283 }
 0x860   : > { %v2288_v35 = vadd.f32 %v2284_v42, %v2272_v11  ;;  %v3749_v22 = vpop.eup %3748 }
 0x862   : > { %3750 = vrcp.f32 %v2288_v35  ;;  %v769_v56 = vpop.xlane.xlu1 %768 }
 0x863   : > { %3752 = vrcp.f32 %v2287_v38  ;;  %v781_v10 = vpop.xlane.xlu0 %780 }
 0x864   : > { %v791_v7 = vadd.f32 %v781_v10, %v769_v56 }
 0x866   : > { %v772_v31 = vpop.xlane.xlu1 %771  ;;  %3754 = vrcp.f32 %v791_v7 }
 0x867   : > { %v784_v13 = vpop.xlane.xlu0 %783 }
 0x868   : > { %v792_v29 = vadd.f32 %v784_v13, %v772_v31 }
 0x86a   : > { %v775_v23 = vpop.xlane.xlu1 %774  ;;  %3756 = vrcp.f32 %v792_v29 }
 0x86b   : > { %v787_v5 = vpop.xlane.xlu0 %786 }
 0x86c   : > { %v3751_v17 = vpop.eup %3750  ;;  %v793_v52 = vadd.f32 %v787_v5, %v775_v23 }
 0x86d   : > { %v3753_v20 = vpop.eup %3752 }
 0x86e   : > { %v778_v15 = vpop.xlane.xlu1 %777  ;;  %3758 = vrcp.f32 %v793_v52 }
 0x86f   : > { %v790_v24 = vpop.xlane.xlu0 %789 }
 0x870   : > { %v794_v41 = vadd.f32 %v790_v24, %v778_v15  ;;  %v3755_v16 = vpop.eup %3754 }
 0x871   : > { %v993_v57 = vmul.f32 %v3755_v16, %v4380_v62 }
 0x872   : > { %3760 = vrcp.f32 %v794_v41 }
 0x874   : > { %v3757_v51 = vpop.eup %3756 }
 0x875   : > { %v994_v8 = vmul.f32 %v3757_v51, %v4378_v61 }
 0x877   : > { %v3638_v60 = vpop.permute.xlu1 %3637 }
 0x878   : > { %v3640_v48 = vunpack.i.h.bf16 %v3638_v60  ;;  %v3639_v53 = vunpack.i.l.bf16 %v3638_v60  ;;  %v3759_v43 = vpop.eup %3758 }
 0x879   : > { %v995_v55 = vmul.f32 %v3759_v43, %v4386_v2 }
 0x87a   : > { %v2553_v46 = vsel %vm516_vm0, %v994_v8, %v3640_v48  ;;  %v2552_v28 = vsel %vm516_vm0, %v993_v57, %v3639_v53 }
 0x87c   : > { %v3761_v4 = vpop.eup %3760 }
 0x87d   : > { %v996_v40 = vmul.f32 %v3761_v4, %v4384_v1  ;;  %v2893_v1 = vld [vmem:[%s4774_s4] ss:$0 sm:$0xff] }
 0x887   : > { %v3648_v0 = vpop.permute.xlu1 %3647 }
 0x888   : > { %v3650_v18 = vunpack.i.h.bf16 %v3648_v0  ;;  %v3649_v47 = vunpack.i.l.bf16 %v3648_v0 }
 0x88a   : > { %v2554_v9 = vsel %vm516_vm0, %v995_v55, %v3649_v47  ;;  %v2555_v32 = vsel %vm516_vm0, %v996_v40, %v3650_v18 }
 0x8a5   : > { %v3255_v25 = vpop.f32.mrb[28].mxu1 }
 0x8a6   : > { %v2501_v37 = vmul.f32 %v3747_v44, %v3255_v25  ;;  %v2477_v58 = vpop.f32.mrb[29].mxu1 }
 0x8a7   : > { %v2500_v27 = vmul.f32 %v3749_v22, %v2477_v58 }
 0x8a9   : > { %v3651_v19 = vpack.i.bf16 %v2501_v37, %v2500_v27  ;;  %v3258_v54 = vpop.f32.mrb[30].mxu1 }
 0x8aa   : > { %v2503_v6 = vmul.f32 %v3751_v17, %v3258_v54  ;;  %v2487_v49 = vpop.f32.mrb[31].mxu1 }
 0x8ab   : > { %v2502_v59 = vmul.f32 %v3753_v20, %v2487_v49  ;;  %3652 = vrot.lane.b32.xlu1 %v3651_v19, %s3961_s24 }
 0x8ad   : > { %v3661_v45 = vpack.i.bf16 %v2503_v6, %v2502_v59 }
 0x8af   : > { %3657 = vrot.lane.b32.xlu1 %v3656_v26, %s3962_s26  ;;  %3662 = vrot.lane.b32.xlu0 %v3661_v45, %s3961_s24  ;;  %v3643_v26 = vpop.permute.xlu0 %3642 }
 0x8b0   : > { %v3645_v14 = vunpack.i.h.bf16 %v3643_v26  ;;  %v3644_v12 = vunpack.i.l.bf16 %v3643_v26 }
 0x8b2   : > { %v2558_v34 = vsel %vm2556_vm3, %v2553_v46, %v3645_v14  ;;  %v2557_v3 = vsel %vm2556_vm3, %v2552_v28, %v3644_v12 }
 0x91d   : > { %v3653_v30 = vpop.permute.xlu1 %3652 }
 0x91e   : > { %v3655_v33 = vunpack.i.h.bf16 %v3653_v30  ;;  %v3654_v63 = vunpack.i.l.bf16 %v3653_v30 }
 0x920   : > { %v2562_v61 = vsel %vm2561_vm4, %v2557_v3, %v3654_v63  ;;  %v2563_v62 = vsel %vm2561_vm4, %v2558_v34, %v3655_v33 }
 0x921   : > { %v3658_v39 = vpop.permute.xlu1 %3657  ;;  %3291 = vmatprep.mubr.f32.mxu0 %v2562_v61  ;;  %v3663_v36 = vpop.permute.xlu0 %3662 }
 0x922   : > { %v3660_v50 = vunpack.i.h.bf16 %v3658_v39  ;;  %v3659_v11 = vunpack.i.l.bf16 %v3658_v39  ;;  %v3665_v42 = vunpack.i.h.bf16 %v3663_v36  ;;  %v3664_v35 = vunpack.i.l.bf16 %v3663_v36  ;;  %3292 = vmatmul.mubr.f32.vlgmr.msra.gmra.mrb[28].mxu0 %v2563_v62 }
 0x924   : > { %v2559_v38 = vsel %vm2556_vm3, %v2554_v9, %v3659_v11  ;;  %v2560_v21 = vsel %vm2556_vm3, %v2555_v32, %v3660_v50 }
 0x925   : > { %v2564_v44 = vsel %vm2561_vm4, %v2559_v38, %v3664_v35  ;;  %v2565_v2 = vsel %vm2561_vm4, %v2560_v21, %v3665_v42 }
 0x926   : > { %3294 = vmatprep.mubr.f32.mxu0 %v2564_v44 }
 0x927   : > { %3295 = vmatmul.mubr.f32.gmra.mrb[30].mxu0 %v2565_v2 }
 0x9f5   : > { %v3293_v25 = vpop.f32.mrb[28].mxu0 }
 0x9f6   : > { %v2661_v22 = vadd.f32 %v3293_v25, %v2893_v1  ;;  %v2655_v37 = vpop.f32.mrb[29].mxu0 }
 0x9f7   : > { %v2656_v58 = vadd.f32 %v2893_v1, %v2655_v37 }
 0x9f8   : > { %2675 = vst [vmem:[%s284_s13 + $0x8] sm:$0xff] %v2661_v22 }
 0x9f9   : > { %2674 = vst [vmem:[%s284_s13] sm:$0xff] %v2656_v58 }
 0x9fa   : > { %v3296_v27 = vpop.f32.mrb[30].mxu0 }
 0x9fb   : > { %v2671_v17 = vadd.f32 %v3296_v27, %v2893_v1  ;;  %v2665_v19 = vpop.f32.mrb[31].mxu0 }
 0x9fc   : > { %v2666_v54 = vadd.f32 %v2893_v1, %v2665_v19 }
 0x9fd   : > { %2677 = vst [vmem:[%s284_s13 + $0x18] sm:$0xff] %v2671_v17 }
 0x9fe   : > { %2676 = vst [vmem:[%s284_s13 + $0x10] sm:$0xff] %v2666_v54 }
 0x9ff   : > { %3889 = shalt.err (!%p3886_p4)
}
 0xa00   : > { %s3890_s24 = scalar_lea.hbm %s4726_s23, 512  ;;  %s3894_s14 = scalar_lea.hbm %s4775_s5, 1024 }
 0xa01   : > { %p3891_p9 = scmp.ne.s32.totalorder %s4726_s23, %s3890_s24  ;;  %p3895_p8 = scmp.lt.u32.totalorder %s4726_s23, %s4775_s5 }
 0xa02   : > { %p3896_p13 = scmp.lt.u32.totalorder %s3894_s14, %s3890_s24  ;;  %p3898_p10 = scmp.lt.u32.totalorder %s3890_s24, %s4726_s23 }
 0xa03   : > { %p3892_p0 = pnand %p3891_p9, %p4145_p5 }
 0xa04   : > { %p3897_p6 = por %p3896_p13, %p3895_p8 }
 0xa05   : > { %p3893_p11 = pneg %p3892_p0 }
 0xa06   : > { %p3899_p3 = por %p3898_p10, %p3897_p6 }
 0xa08   : > { %p3900_p7 = pnand %p3899_p3, %p3893_p11 }
 0xa0a   : > { %3903 = shalt.err (!%p3900_p7)
}
 0xa0b   : > { %s3965_s10 = smov 128   ;;  %s3966_s30 = smov 8  }
 0xa0c   : > { %3503 = dma.vmem_to_hbm [thread:$0]  (%p4145_p5), %s4721_s16, 512, %s4726_s23, %s2679_s7, %s3965_s10, %s3965_s10, %s3966_s30  }
 0xa0d PF: > { %s2707_s12 = sand.u32 1, %s3938_s18   ;;  %p4795_p12 = scmp.ne.s32.totalorder %s4780_s25, 0 }
 0xa0e   : > { %p4796_p2 = scmp.ge.s32.totalorder %s3950_s21, 2  ;;  %s2708_s8 = scalar_lea.sflag [#allocation4], %s2707_s12 }
 0xa10   : > { %p3520_p1 = pnand %p4796_p2, %p4795_p12 }
 0xa12   : > { %3933 = dma.done.wait (!%p3520_p1), %s2708_s8, 512  }
 0xa13   : > { %3935 = vsyncadd (!%p3520_p1), %s2708_s8, 4294966784  ;;  %p20_p4 = scmp.ge.s32.totalorder %s4131_s28, 4   ;;  %s4797_s18 = smov %s3942_s19 }
 0xa14   : > { %s4798_s19 = smov %s3946_s20  ;;  %s4799_s20 = smov %s4141_s27 }
 0xa15   : > { %s4800_s21 = smov %s4131_s28  ;;  %22 = sbr.rel (!%p20_p4) target bundleno = 7 (0x7), region = 97 }
 0xa1c   :  { %2713 = vsyncpa [#allocation3], 1 }
 0xa1d   :  { %2715 = vsyncpa [#allocation3 + $0x1], 1 }
 0xa1e   :  { %2716 = vsyncpa [#allocation6], 1 }
 0xa1f   :  { %2717 = vsyncpa [#allocation9], 1 }
 0xa20   :  { %2718 = vsyncpa [#allocation4], 1 }
 0xa21   :  { %2720 = vsyncpa [#allocation4 + $0x1], 1 }

</bundles_post_ra>
